<compile_context>
chip_gen: v7x
topology: tpu7x:2x2x1
jax: 0.10.0
libtpu: 0.0.40
codegen_flags: <defaults>
</compile_context>

<pallas_src>
import functools

import jax
import jax.numpy as jnp
from jax.experimental import pallas as pl
from jax.experimental.pallas import tpu as pltpu


def _round_up(n, m):
    return ((n + m - 1) // m) * m


def _generator_kernel(inp_ref,
                      w1_ref, b1_ref,
                      w2_ref, b2_ref,
                      w3_ref, b3_ref,
                      w4_ref, b4_ref,
                      w5_ref, b5_ref,
                      out_ref,
                      *, compute_dtype):
    """Whole 5-layer MLP for one batch tile, all operands resident in VMEM."""

    def dense(h, w_ref, b_ref, relu):
        # MXU matmul with low-precision inputs, f32 accumulation.
        acc = jnp.dot(h.astype(compute_dtype), w_ref[...],
                      preferred_element_type=jnp.float32)
        acc = acc + b_ref[...]           # bias-add in f32
        if relu:
            acc = jnp.maximum(acc, 0.0)  # ReLU in f32 (native VPU path on v5e)
        return acc

    h = inp_ref[...]
    h = dense(h, w1_ref, b1_ref, True)
    h = dense(h, w2_ref, b2_ref, True)
    h = dense(h, w3_ref, b3_ref, True)
    h = dense(h, w4_ref, b4_ref, True)
    out = dense(h, w5_ref, b5_ref, False)
    out_ref[...] = out.astype(out_ref.dtype)


def generator_forward(z, x, params, k, *, max_block_b=256, use_bf16=True):
    """Pallas-backed forward pass of `Generator`.

    z: (B, z_dim) f32, x: (B, x_dim) f32.
    params: dict with w1..w5 of shape (in, out) f32 and b1..b5 of shape (1, out) f32.
    Returns theta of shape (B, k, (k*theta_dim)//k).
    """
    compute_dtype = jnp.bfloat16 if use_bf16 else jnp.float32

    combined = jnp.concatenate([z, x], axis=-1).astype(jnp.float32)  # glue
    B, in_dim = combined.shape
    out_dim = params["w5"].shape[1]                                  # k * theta_dim

    # --- pad to lane-dense / MXU-friendly sizes (zeros, exact semantics) ----
    in_dim_p = _round_up(in_dim, 128)
    out_dim_p = _round_up(out_dim, 128)

    # Adaptive batch tile: multiple of 8 (sublane), capped at max_block_b.
    block_b = min(_round_up(max_block_b, 8), _round_up(B, 8))
    b_pad = _round_up(B, block_b)

    combined_p = jnp.pad(combined,
                         ((0, b_pad - B), (0, in_dim_p - in_dim)))

    w1 = jnp.pad(params["w1"], ((0, in_dim_p - in_dim), (0, 0))).astype(compute_dtype)
    w2 = params["w2"].astype(compute_dtype)
    w3 = params["w3"].astype(compute_dtype)
    w4 = params["w4"].astype(compute_dtype)
    w5 = jnp.pad(params["w5"], ((0, 0), (0, out_dim_p - out_dim))).astype(compute_dtype)

    b1 = params["b1"].astype(jnp.float32)
    b2 = params["b2"].astype(jnp.float32)
    b3 = params["b3"].astype(jnp.float32)
    b4 = params["b4"].astype(jnp.float32)
    b5 = jnp.pad(params["b5"], ((0, 0), (0, out_dim_p - out_dim))).astype(jnp.float32)

    weights = [w1, b1, w2, b2, w3, b3, w4, b4, w5, b5]

    # --- grid / specs --------------------------------------------------------
    grid = (b_pad // block_b,)

    # Grid-invariant parameters: constant index_map -> fetched once, resident.
    def full_spec(shape):
        return pl.BlockSpec(shape, lambda i: (0, 0))

    in_specs = [pl.BlockSpec((block_b, in_dim_p), lambda i: (i, 0))]
    in_specs += [full_spec(w.shape) for w in weights]
    out_spec = pl.BlockSpec((block_b, out_dim_p), lambda i: (i, 0))

    flat = pl.pallas_call(
        functools.partial(_generator_kernel, compute_dtype=compute_dtype),
        out_shape=jax.ShapeDtypeStruct((b_pad, out_dim_p), jnp.float32),
        grid_spec=pltpu.PrefetchScalarGridSpec(
            num_scalar_prefetch=0,
            grid=grid,
            in_specs=in_specs,
            out_specs=out_spec,
        ),
        compiler_params=pltpu.CompilerParams(
            dimension_semantics=("parallel",),      # batch axis -> megacore on v7x
            vmem_limit_bytes=48 * 1024 * 1024,      # headroom under v7x 64 MiB
        ),
    )(combined_p, *weights)

    # Drop padded rows / columns, then reshape (glue).
    flat = flat[:B, :out_dim]
    theta_dim = out_dim // k
    return flat.reshape(-1, k, theta_dim)


def init_params(key, z_dim, x_dim, theta_dim, k):
    """Deterministic synthetic parameters (shapes match the nn.Linear layers)."""
    dims = [(z_dim + x_dim, 128), (128, 256), (256, 512), (512, 1024),
            (1024, k * theta_dim)]
    params = {}
    for idx, (fan_in, fan_out) in enumerate(dims, start=1):
        key, kw, kb = jax.random.split(key, 3)
        bound = 1.0 / jnp.sqrt(fan_in)
        # stored as (in, out): transpose of PyTorch's (out, in) weight
        params[f"w{idx}"] = jax.random.uniform(
            kw, (fan_in, fan_out), jnp.float32, -bound, bound)
        params[f"b{idx}"] = jax.random.uniform(
            kb, (1, fan_out), jnp.float32, -bound, bound)
    return params


def reference_forward(z, x, params, k, *, compute_dtype=jnp.bfloat16):
    """Pure-JAX reference emulating the kernel's numerics (bf16 matmul inputs,
    f32 accumulation, f32 bias/ReLU)."""
    h = jnp.concatenate([z, x], axis=-1).astype(jnp.float32)
    for i in range(1, 6):
        w = params[f"w{i}"].astype(compute_dtype)
        acc = jnp.dot(h.astype(compute_dtype), w,
                      preferred_element_type=jnp.float32)
        h = acc + params[f"b{i}"]
        if i < 5:
            h = jnp.maximum(h, 0.0)
    return h.reshape(-1, k, h.shape[1] // k)


if __name__ == "__main__":
    # Small shapes consistent with the module.
    B, z_dim, x_dim, theta_dim, k = 8, 8, 8, 4, 3

    key = jax.random.PRNGKey(0)
    key, kz, kx = jax.random.split(key, 3)
    z = jax.random.normal(kz, (B, z_dim), jnp.float32)
    x = jax.random.normal(kx, (B, x_dim), jnp.float32)

    params = init_params(key, z_dim, x_dim, theta_dim, k)

    theta = generator_forward(z, x, params, k)
    theta = jax.block_until_ready(theta)

    ref = reference_forward(z, x, params, k)
    assert theta.shape == (B, k, theta_dim), theta.shape
    assert jnp.allclose(theta, ref, atol=2e-3, rtol=2e-3), "mismatch vs reference"

    print("KERNEL_OK")
</pallas_src>

<mosaic_0001>
module attributes {stable_mosaic.version = 11 : i64} {
  func.func @_generator_kernel(%arg0: i32, %arg1: memref<8x128xf32, #tpu.memory_space<vmem>>, %arg2: memref<128x128xbf16, #tpu.memory_space<vmem>>, %arg3: memref<1x128xf32, #tpu.memory_space<vmem>>, %arg4: memref<128x256xbf16, #tpu.memory_space<vmem>>, %arg5: memref<1x256xf32, #tpu.memory_space<vmem>>, %arg6: memref<256x512xbf16, #tpu.memory_space<vmem>>, %arg7: memref<1x512xf32, #tpu.memory_space<vmem>>, %arg8: memref<512x1024xbf16, #tpu.memory_space<vmem>>, %arg9: memref<1x1024xf32, #tpu.memory_space<vmem>>, %arg10: memref<1024x128xbf16, #tpu.memory_space<vmem>>, %arg11: memref<1x128xf32, #tpu.memory_space<vmem>>, %arg12: memref<8x128xf32, #tpu.memory_space<vmem>>) attributes {dimension_semantics = [#tpu.dimension_semantics<parallel>], iteration_bounds = array<i64: 1>, scalar_prefetch = 0 : i64, scratch_operands = 0 : i64, tpu.core_type = #tpu.core_type<tc>, window_params = [{transform_indices = @transform_0, window_bounds = array<i64: 8, 128>}, {pipeline_mode = #tpu.pipeline_mode<synchronous>, transform_indices = @transform_1, window_bounds = array<i64: 128, 128>}, {pipeline_mode = #tpu.pipeline_mode<synchronous>, transform_indices = @transform_2, window_bounds = array<i64: 1, 128>}, {pipeline_mode = #tpu.pipeline_mode<synchronous>, transform_indices = @transform_3, window_bounds = array<i64: 128, 256>}, {pipeline_mode = #tpu.pipeline_mode<synchronous>, transform_indices = @transform_4, window_bounds = array<i64: 1, 256>}, {pipeline_mode = #tpu.pipeline_mode<synchronous>, transform_indices = @transform_5, window_bounds = array<i64: 256, 512>}, {pipeline_mode = #tpu.pipeline_mode<synchronous>, transform_indices = @transform_6, window_bounds = array<i64: 1, 512>}, {pipeline_mode = #tpu.pipeline_mode<synchronous>, transform_indices = @transform_7, window_bounds = array<i64: 512, 1024>}, {pipeline_mode = #tpu.pipeline_mode<synchronous>, transform_indices = @transform_8, window_bounds = array<i64: 1, 1024>}, {pipeline_mode = #tpu.pipeline_mode<synchronous>, transform_indices = @transform_9, window_bounds = array<i64: 1024, 128>}, {pipeline_mode = #tpu.pipeline_mode<synchronous>, transform_indices = @transform_10, window_bounds = array<i64: 1, 128>}, {transform_indices = @transform_11, window_bounds = array<i64: 8, 128>}]} {
    %c0 = arith.constant 0 : index
    %c0_0 = arith.constant 0 : index
    %0 = vector.load %arg1[%c0, %c0_0] : memref<8x128xf32, #tpu.memory_space<vmem>>, vector<8x128xf32>
    %1 = arith.truncf %0 : vector<8x128xf32> to vector<8x128xbf16>
    %c0_1 = arith.constant 0 : index
    %c0_2 = arith.constant 0 : index
    %2 = vector.load %arg2[%c0_1, %c0_2] : memref<128x128xbf16, #tpu.memory_space<vmem>>, vector<128x128xbf16>
    %cst = arith.constant dense<0.000000e+00> : vector<8x128xf32>
    %3 = tpu.matmul %1, %2, %cst {dimension_numbers = #tpu.dot_dimension_numbers<[1], [0], [0], [1], [0, 0, 1, 1], [], []>} : vector<8x128xbf16>, vector<128x128xbf16>, vector<8x128xf32> -> vector<8x128xf32>
    %c0_3 = arith.constant 0 : index
    %c0_4 = arith.constant 0 : index
    %4 = vector.load %arg3[%c0_3, %c0_4] : memref<1x128xf32, #tpu.memory_space<vmem>>, vector<1x128xf32>
    %5 = vector.broadcast %4 : vector<1x128xf32> to vector<8x128xf32>
    %6 = arith.addf %3, %5 : vector<8x128xf32>
    %cst_5 = arith.constant 0.000000e+00 : f32
    %7 = vector.broadcast %cst_5 : f32 to vector<8x128xf32>
    %8 = arith.maximumf %6, %7 : vector<8x128xf32>
    %9 = arith.truncf %8 : vector<8x128xf32> to vector<8x128xbf16>
    %c0_6 = arith.constant 0 : index
    %c0_7 = arith.constant 0 : index
    %10 = vector.load %arg4[%c0_6, %c0_7] : memref<128x256xbf16, #tpu.memory_space<vmem>>, vector<128x256xbf16>
    %cst_8 = arith.constant dense<0.000000e+00> : vector<8x256xf32>
    %11 = tpu.matmul %9, %10, %cst_8 {dimension_numbers = #tpu.dot_dimension_numbers<[1], [0], [0], [1], [0, 0, 1, 1], [], []>} : vector<8x128xbf16>, vector<128x256xbf16>, vector<8x256xf32> -> vector<8x256xf32>
    %c0_9 = arith.constant 0 : index
    %c0_10 = arith.constant 0 : index
    %12 = vector.load %arg5[%c0_9, %c0_10] : memref<1x256xf32, #tpu.memory_space<vmem>>, vector<1x256xf32>
    %13 = vector.broadcast %12 : vector<1x256xf32> to vector<8x256xf32>
    %14 = arith.addf %11, %13 : vector<8x256xf32>
    %cst_11 = arith.constant 0.000000e+00 : f32
    %15 = vector.broadcast %cst_11 : f32 to vector<8x256xf32>
    %16 = arith.maximumf %14, %15 : vector<8x256xf32>
    %17 = arith.truncf %16 : vector<8x256xf32> to vector<8x256xbf16>
    %c0_12 = arith.constant 0 : index
    %c0_13 = arith.constant 0 : index
    %18 = vector.load %arg6[%c0_12, %c0_13] : memref<256x512xbf16, #tpu.memory_space<vmem>>, vector<256x512xbf16>
    %cst_14 = arith.constant dense<0.000000e+00> : vector<8x512xf32>
    %19 = tpu.matmul %17, %18, %cst_14 {dimension_numbers = #tpu.dot_dimension_numbers<[1], [0], [0], [1], [0, 0, 1, 1], [], []>} : vector<8x256xbf16>, vector<256x512xbf16>, vector<8x512xf32> -> vector<8x512xf32>
    %c0_15 = arith.constant 0 : index
    %c0_16 = arith.constant 0 : index
    %20 = vector.load %arg7[%c0_15, %c0_16] : memref<1x512xf32, #tpu.memory_space<vmem>>, vector<1x512xf32>
    %21 = vector.broadcast %20 : vector<1x512xf32> to vector<8x512xf32>
    %22 = arith.addf %19, %21 : vector<8x512xf32>
    %cst_17 = arith.constant 0.000000e+00 : f32
    %23 = vector.broadcast %cst_17 : f32 to vector<8x512xf32>
    %24 = arith.maximumf %22, %23 : vector<8x512xf32>
    %25 = arith.truncf %24 : vector<8x512xf32> to vector<8x512xbf16>
    %c0_18 = arith.constant 0 : index
    %c0_19 = arith.constant 0 : index
    %26 = vector.load %arg8[%c0_18, %c0_19] : memref<512x1024xbf16, #tpu.memory_space<vmem>>, vector<512x1024xbf16>
    %cst_20 = arith.constant dense<0.000000e+00> : vector<8x1024xf32>
    %27 = tpu.matmul %25, %26, %cst_20 {dimension_numbers = #tpu.dot_dimension_numbers<[1], [0], [0], [1], [0, 0, 1, 1], [], []>} : vector<8x512xbf16>, vector<512x1024xbf16>, vector<8x1024xf32> -> vector<8x1024xf32>
    %c0_21 = arith.constant 0 : index
    %c0_22 = arith.constant 0 : index
    %28 = vector.load %arg9[%c0_21, %c0_22] : memref<1x1024xf32, #tpu.memory_space<vmem>>, vector<1x1024xf32>
    %29 = vector.broadcast %28 : vector<1x1024xf32> to vector<8x1024xf32>
    %30 = arith.addf %27, %29 : vector<8x1024xf32>
    %cst_23 = arith.constant 0.000000e+00 : f32
    %31 = vector.broadcast %cst_23 : f32 to vector<8x1024xf32>
    %32 = arith.maximumf %30, %31 : vector<8x1024xf32>
    %33 = arith.truncf %32 : vector<8x1024xf32> to vector<8x1024xbf16>
    %c0_24 = arith.constant 0 : index
    %c0_25 = arith.constant 0 : index
    %34 = vector.load %arg10[%c0_24, %c0_25] : memref<1024x128xbf16, #tpu.memory_space<vmem>>, vector<1024x128xbf16>
    %cst_26 = arith.constant dense<0.000000e+00> : vector<8x128xf32>
    %35 = tpu.matmul %33, %34, %cst_26 {dimension_numbers = #tpu.dot_dimension_numbers<[1], [0], [0], [1], [0, 0, 1, 1], [], []>} : vector<8x1024xbf16>, vector<1024x128xbf16>, vector<8x128xf32> -> vector<8x128xf32>
    %c0_27 = arith.constant 0 : index
    %c0_28 = arith.constant 0 : index
    %36 = vector.load %arg11[%c0_27, %c0_28] : memref<1x128xf32, #tpu.memory_space<vmem>>, vector<1x128xf32>
    %37 = vector.broadcast %36 : vector<1x128xf32> to vector<8x128xf32>
    %38 = arith.addf %35, %37 : vector<8x128xf32>
    %c0_29 = arith.constant 0 : index
    %c0_30 = arith.constant 0 : index
    %39 = vector.load %arg12[%c0_29, %c0_30] : memref<8x128xf32, #tpu.memory_space<vmem>>, vector<8x128xf32>
    tpu.vector_store %arg12[%c0_29, %c0_30], %38 {strides = array<i32>} : memref<8x128xf32, #tpu.memory_space<vmem>>, vector<8x128xf32>,
    return
  }
  func.func @transform_0(%arg0: i32) -> (i32, i32) {
    %c0_i32 = arith.constant 0 : i32
    %c0_i32_0 = arith.constant 0 : i32
    return %arg0, %c0_i32 : i32, i32
  }
  func.func @transform_1(%arg0: i32) -> (i32, i32) {
    %c0_i32 = arith.constant 0 : i32
    %c0_i32_0 = arith.constant 0 : i32
    %c0_i32_1 = arith.constant 0 : i32
    return %c0_i32, %c0_i32_0 : i32, i32
  }
  func.func @transform_2(%arg0: i32) -> (i32, i32) {
    %c0_i32 = arith.constant 0 : i32
    %c0_i32_0 = arith.constant 0 : i32
    %c0_i32_1 = arith.constant 0 : i32
    return %c0_i32, %c0_i32_0 : i32, i32
  }
  func.func @transform_3(%arg0: i32) -> (i32, i32) {
    %c0_i32 = arith.constant 0 : i32
    %c0_i32_0 = arith.constant 0 : i32
    %c0_i32_1 = arith.constant 0 : i32
    return %c0_i32, %c0_i32_0 : i32, i32
  }
  func.func @transform_4(%arg0: i32) -> (i32, i32) {
    %c0_i32 = arith.constant 0 : i32
    %c0_i32_0 = arith.constant 0 : i32
    %c0_i32_1 = arith.constant 0 : i32
    return %c0_i32, %c0_i32_0 : i32, i32
  }
  func.func @transform_5(%arg0: i32) -> (i32, i32) {
    %c0_i32 = arith.constant 0 : i32
    %c0_i32_0 = arith.constant 0 : i32
    %c0_i32_1 = arith.constant 0 : i32
    return %c0_i32, %c0_i32_0 : i32, i32
  }
  func.func @transform_6(%arg0: i32) -> (i32, i32) {
    %c0_i32 = arith.constant 0 : i32
    %c0_i32_0 = arith.constant 0 : i32
    %c0_i32_1 = arith.constant 0 : i32
    return %c0_i32, %c0_i32_0 : i32, i32
  }
  func.func @transform_7(%arg0: i32) -> (i32, i32) {
    %c0_i32 = arith.constant 0 : i32
    %c0_i32_0 = arith.constant 0 : i32
    %c0_i32_1 = arith.constant 0 : i32
    return %c0_i32, %c0_i32_0 : i32, i32
  }
  func.func @transform_8(%arg0: i32) -> (i32, i32) {
    %c0_i32 = arith.constant 0 : i32
    %c0_i32_0 = arith.constant 0 : i32
    %c0_i32_1 = arith.constant 0 : i32
    return %c0_i32, %c0_i32_0 : i32, i32
  }
  func.func @transform_9(%arg0: i32) -> (i32, i32) {
    %c0_i32 = arith.constant 0 : i32
    %c0_i32_0 = arith.constant 0 : i32
    %c0_i32_1 = arith.constant 0 : i32
    return %c0_i32, %c0_i32_0 : i32, i32
  }
  func.func @transform_10(%arg0: i32) -> (i32, i32) {
    %c0_i32 = arith.constant 0 : i32
    %c0_i32_0 = arith.constant 0 : i32
    %c0_i32_1 = arith.constant 0 : i32
    return %c0_i32, %c0_i32_0 : i32, i32
  }
  func.func @transform_11(%arg0: i32) -> (i32, i32) {
    %c0_i32 = arith.constant 0 : i32
    %c0_i32_0 = arith.constant 0 : i32
    return %arg0, %c0_i32 : i32, i32
  }
}

</mosaic_0001>

<bundles_post_ra>
// kernel: tpu_custom_call.1
= control target key start
LH: loop header
LB: loop body
LE: loop exit
PB: predicated region body
PF: predicated region fallthrough
CT: control target
= control target key end

     0   :  { %16 = vsyncpa [#allocation3], 0  ;;  %s4690_s0 = inlined_call_operand.hbm [shape: f32[8,128], index: 0, kind: input, shape index: {}]   ;;  %s4691_s1 = inlined_call_operand.hbm [shape: bf16[128,128], index: 1, kind: input, shape index: {}]   ;;  %s4692_s2 = inlined_call_operand.vmem [shape: f32[1,128], index: 2, kind: input, shape index: {}]   ;;  %s4693_s3 = inlined_call_operand.hbm [shape: bf16[128,256], index: 3, kind: input, shape index: {}]   ;;  %s4694_s4 = inlined_call_operand.vmem [shape: f32[1,256], index: 4, kind: input, shape index: {}]   ;;  %s4695_s5 = inlined_call_operand.hbm [shape: bf16[256,512], index: 5, kind: input, shape index: {}]   ;;  %s4696_s6 = inlined_call_operand.vmem [shape: f32[1,512], index: 6, kind: input, shape index: {}]   ;;  %s4697_s7 = inlined_call_operand.hbm [shape: bf16[512,1024], index: 7, kind: input, shape index: {}]   ;;  %s4698_s8 = inlined_call_operand.vmem [shape: f32[1,1024], index: 8, kind: input, shape index: {}]   ;;  %s4699_s9 = inlined_call_operand.hbm [shape: bf16[1024,128], index: 9, kind: input, shape index: {}]   ;;  %s4700_s10 = inlined_call_operand.vmem [shape: f32[1,128], index: 10, kind: input, shape index: {}]   ;;  %s4701_s11 = inlined_call_operand.hbm [shape: f32[8,128], index: 11, kind: output, shape index: {}]  }
   0x1   :  { %17 = vsyncpa [#allocation6], 0 }
   0x2   :  { %18 = vsyncpa [#allocation9], 0 }
   0x3   :  { %19 = vsyncpa [#allocation12], 0 }
   0x4   :  { %20 = vsyncpa [#allocation4], 0  ;;  %s4429_s17 = smov [#allocation5]   ;;  %s4265_s21 = scalar_lea.hbm %s4691_s1, 1024 }
   0x5   :  { %s36_s18 = sshll.u32 %s4429_s17, 4  ;;  %p4266_p0 = scmp.ne.s32.totalorder %s4691_s1, %s4265_s21  ;;  %s37_s18 = int_to_ptr.vmem [resolvable:$true] %s36_s18 }
   0x6   :  { %p4269_p1 = scmp.lt.u32.totalorder %s4265_s21, %s4691_s1 }
   0x8   :  { %p4271_p2 = pnand %p4269_p1, %p4266_p0 }
   0xa   :  { %4274 = shalt.err (!%p4271_p2)
}
   0xb   :  { %s4275_s26 = scalar_lea.vmem %s37_s18, 1024  ;;  %p4280_p4 = scmp.lt.s32.totalorder %s37_s18, %s37_s18 }
   0xc   :  { %p4276_p3 = scmp.ne.s32.totalorder %s37_s18, %s4275_s26  ;;  %p4281_p5 = scmp.lt.s32.totalorder %s4275_s26, %s4275_s26 }
   0xe   :  { %p4282_p6 = por %p4281_p5, %p4280_p4 }
  0x10   :  { %p4283_p7 = pnand %p4282_p6, %p4276_p3 }
  0x12   :  { %4286 = shalt.err (!%p4283_p7)
}
  0x13   :  { %s4430_s27 = smov 64   ;;  %s4431_s28 = smov 4  }
  0x14   :  { %42 = dma.hbm_to_vmem [thread:$0]  %s4691_s1, 1024, %s37_s18, [#allocation6], %s4430_s27, %s4430_s27, %s4431_s28  }
  0x15   :  { %s4432_s12 = smov [#allocation8]   ;;  %s4287_s16 = scalar_lea.hbm %s4695_s5, 8192 }
  0x16   :  { %s64_s13 = sshll.u32 %s4432_s12, 4  ;;  %p4288_p8 = scmp.ne.s32.totalorder %s4695_s5, %s4287_s16  ;;  %s65_s13 = int_to_ptr.vmem [resolvable:$true] %s64_s13 }
  0x17   :  { %p4291_p9 = scmp.lt.u32.totalorder %s4287_s16, %s4695_s5 }
  0x19   :  { %p4293_p10 = pnand %p4291_p9, %p4288_p8 }
  0x1b   :  { %4296 = shalt.err (!%p4293_p10)
}
  0x1c   :  { %s4297_s22 = scalar_lea.vmem %s65_s13, 8192  ;;  %p4302_p12 = scmp.lt.s32.totalorder %s65_s13, %s65_s13 }
  0x1d   :  { %p4298_p11 = scmp.ne.s32.totalorder %s65_s13, %s4297_s22  ;;  %p4303_p13 = scmp.lt.s32.totalorder %s4297_s22, %s4297_s22 }
  0x1f   :  { %p4304_p0 = por %p4303_p13, %p4302_p12 }
  0x21   :  { %p4305_p1 = pnand %p4304_p0, %p4298_p11 }
  0x23   :  { %4308 = shalt.err (!%p4305_p1)
}
  0x24   :  { %s4433_s1 = smov 256   ;;  %s4434_s18 = smov 16  }
  0x25   :  { %70 = dma.hbm_to_vmem [thread:$0]  %s4695_s5, 8192, %s65_s13, [#allocation9], %s4433_s1, %s4433_s1, %s4434_s18  }
  0x26   :  { %s4435_s25 = smov [#allocation2]   ;;  %s4436_s29 = smov [#allocation7]  }
  0x27   :  { %s27_s26 = sshll.u32 %s4435_s25, 4  ;;  %s50_s30 = sshll.u32 %s4436_s29, 4  ;;  %s28_s26 = int_to_ptr.vmem [resolvable:$true] %s27_s26  ;;  %s4534_s30 = int_to_ptr.vmem [resolvable:$true] %s50_s30 }
  0x28   :  { %s4309_s15 = scalar_lea.hbm %s4690_s0, 128 }
  0x29   :  { %p4310_p2 = scmp.ne.s32.totalorder %s4690_s0, %s4309_s15  ;;  %p4313_p3 = scmp.lt.u32.totalorder %s4309_s15, %s4690_s0 }
  0x2b   :  { %p4315_p4 = pnand %p4313_p3, %p4310_p2 }
  0x2d   :  { %4318 = shalt.err (!%p4315_p4)
}
  0x2e   :  { %s4319_s5 = scalar_lea.vmem %s28_s26, 128  ;;  %p4324_p6 = scmp.lt.s32.totalorder %s28_s26, %s28_s26 }
  0x2f   :  { %p4320_p5 = scmp.ne.s32.totalorder %s28_s26, %s4319_s5  ;;  %p4325_p7 = scmp.lt.s32.totalorder %s4319_s5, %s4319_s5 }
  0x31   :  { %p4326_p8 = por %p4325_p7, %p4324_p6 }
  0x33   :  { %p4327_p9 = pnand %p4326_p8, %p4320_p5 }
  0x35   :  { %4330 = shalt.err (!%p4327_p9)
}
  0x36   :  { %30 = dma.hbm_to_vmem [thread:$0]  %s4690_s0, 128, %s28_s26, [#allocation3]  }
  0x37   :  { %s4331_s18 = scalar_lea.hbm %s4693_s3, 2048 }
  0x38   :  { %p4332_p10 = scmp.ne.s32.totalorder %s4693_s3, %s4331_s18  ;;  %p4335_p11 = scmp.lt.u32.totalorder %s4331_s18, %s4693_s3 }
  0x3a   :  { %p4337_p12 = pnand %p4335_p11, %p4332_p10 }
  0x3c   :  { %4340 = shalt.err (!%p4337_p12)
}
  0x3d   :  { %s4341_s12 = scalar_lea.vmem %s4534_s30, 2048  ;;  %p4346_p0 = scmp.lt.s32.totalorder %s4534_s30, %s4534_s30 }
  0x3e   :  { %p4342_p13 = scmp.ne.s32.totalorder %s4534_s30, %s4341_s12  ;;  %p4347_p1 = scmp.lt.s32.totalorder %s4341_s12, %s4341_s12 }
  0x40   :  { %p4348_p2 = por %p4347_p1, %p4346_p0 }
  0x42   :  { %p4349_p3 = pnand %p4348_p2, %p4342_p13 }
  0x44   :  { %4352 = shalt.err (!%p4349_p3)
}
  0x45   :  { %s4437_s0 = smov 128   ;;  %s4438_s26 = smov 8  }
  0x46   :  { %56 = dma.hbm_to_vmem [thread:$0]  %s4693_s3, 2048, %s4534_s30, [#allocation6], %s4437_s0, %s4437_s0, %s4438_s26  }
  0x47   :  { %s4439_s16 = smov [#allocation10]   ;;  %s4353_s5 = scalar_lea.hbm %s4697_s7, 32768 }
  0x48   :  { %s78_s17 = sshll.u32 %s4439_s16, 4  ;;  %p4354_p4 = scmp.ne.s32.totalorder %s4697_s7, %s4353_s5  ;;  %s79_s17 = int_to_ptr.vmem [resolvable:$true] %s78_s17 }
  0x49   :  { %p4357_p5 = scmp.lt.u32.totalorder %s4353_s5, %s4697_s7 }
  0x4b   :  { %p4359_p6 = pnand %p4357_p5, %p4354_p4 }
  0x4d   :  { %4362 = shalt.err (!%p4359_p6)
}
  0x4e   :  { %s4363_s18 = scalar_lea.vmem %s79_s17, 32768  ;;  %p4368_p8 = scmp.lt.s32.totalorder %s79_s17, %s79_s17 }
  0x4f   :  { %p4364_p7 = scmp.ne.s32.totalorder %s79_s17, %s4363_s18  ;;  %p4369_p9 = scmp.lt.s32.totalorder %s4363_s18, %s4363_s18 }
  0x51   :  { %p4370_p10 = por %p4369_p9, %p4368_p8 }
  0x53   :  { %p4371_p11 = pnand %p4370_p10, %p4364_p7 }
  0x55   :  { %4374 = shalt.err (!%p4371_p11)
}
  0x56   :  { %s4440_s3 = smov 512   ;;  %s4441_s30 = smov 32  }
  0x57   :  { %84 = dma.hbm_to_vmem [thread:$0]  %s4697_s7, 32768, %s79_s17, [#allocation9], %s4440_s3, %s4440_s3, %s4441_s30  }
  0x58   :  { %s4442_s25 = smov [#allocation11]   ;;  %s4375_s26 = scalar_lea.hbm %s4699_s9, 8192 }
  0x59   :  { %s92_s29 = sshll.u32 %s4442_s25, 4  ;;  %p4376_p12 = scmp.ne.s32.totalorder %s4699_s9, %s4375_s26  ;;  %s93_s29 = int_to_ptr.vmem [resolvable:$true] %s92_s29 }
  0x5a   :  { %p4379_p13 = scmp.lt.u32.totalorder %s4375_s26, %s4699_s9 }
  0x5c   :  { %p4381_p0 = pnand %p4379_p13, %p4376_p12 }
  0x5e   :  { %4384 = shalt.err (!%p4381_p0)
}
  0x5f   :  { %s4385_s20 = scalar_lea.vmem %s93_s29, 8192  ;;  %p4390_p2 = scmp.lt.s32.totalorder %s93_s29, %s93_s29 }
  0x60   :  { %p4386_p1 = scmp.ne.s32.totalorder %s93_s29, %s4385_s20  ;;  %p4391_p3 = scmp.lt.s32.totalorder %s4385_s20, %s4385_s20 }
  0x62   :  { %p4392_p4 = por %p4391_p3, %p4390_p2 }
  0x64   :  { %p4393_p5 = pnand %p4392_p4, %p4386_p1 }
  0x66   :  { %4396 = shalt.err (!%p4393_p5)
}
  0x67   :  { %98 = dma.hbm_to_vmem [thread:$0]  %s4699_s9, 8192, %s93_s29, [#allocation12], %s4430_s27, %s4430_s27, %s4431_s28  }
  0x68   :  { %4419 = dma.done.wait [#allocation3], 128  }
  0x69   :  { %4420 = vsyncadd [#allocation3], 4294967168 }
  0x6a   :  { %4421 = dma.done.wait [#allocation6], 3072  }
  0x6b   :  { %4422 = vsyncadd [#allocation6], 4294964224 }
  0x6c   :  { %4423 = dma.done.wait [#allocation9], 40960  }
  0x6d   :  { %4424 = vsyncadd [#allocation9], 4294926336 }
  0x6e   :  { %4425 = dma.done.wait [#allocation12], 8192  }
  0x6f   :  { %4426 = vsyncadd [#allocation12], 4294959104  ;;  %v4443_v0 = vmov 0.0   ;;  %vm4444_vm0 = vmmov 0   ;;  %v4073_v1 = vld [vmem:[#allocation5] sm:$0xff]   ;;  %v4074_v2 = vld [vmem:[#allocation5 + $0x8] sm:$0xff]  }
  0x70   :  { %4011 = vmatprep.subr.bf16.mxu0 %v4443_v0  ;;  %4027 = vmatprep.mubr.msk.bf16.mxu0 %vm4444_vm0, %v4443_v0  ;;  %v4075_v3 = vld [vmem:[#allocation5 + $0x10] sm:$0xff]   ;;  %v4081_v4 = vld [vmem:[#allocation7 + $0x4] ss:$8 sps:$4 sm:$0xff]   ;;  %v4083_v5 = vld [vmem:[#allocation7] ss:$8 sps:$4 sm:$0xff]   ;;  %v4445_v27 = vmov 0  }
  0x71   :  { %4012 = vmatpush3.bf16.msra.mxu0 %v4073_v1  ;;  %v4076_v6 = vld [vmem:[#allocation5 + $0x18] sm:$0xff]   ;;  %343 = vmatprep.subr.bf16.mxu1 %v4081_v4  ;;  %v4087_v9 = vld [vmem:[#allocation7 + $0x24] ss:$8 sps:$4 sm:$0xff]   ;;  %v4089_v11 = vld [vmem:[#allocation7 + $0x20] ss:$8 sps:$4 sm:$0xff]  }
  0x72   :  { %4013 = vmatprep.subr.bf16.mxu0 %v4443_v0  ;;  %v4084_v7 = vld [vmem:[#allocation7 + $0x14] ss:$8 sps:$4 sm:$0xff]   ;;  %344 = vmatpush1.bf16.msra.mxu1 %v4083_v5  ;;  %v4086_v8 = vld [vmem:[#allocation7 + $0x10] ss:$8 sps:$4 sm:$0xff]   ;;  %v4077_v10 = vld [vmem:[#allocation5 + $0x20] sm:$0xff]  }
  0x73   :  { %345 = vmatprep.subr.bf16.mxu1 %v4084_v7  ;;  %v4078_v12 = vld [vmem:[#allocation5 + $0x28] sm:$0xff]   ;;  %v4090_v13 = vld [vmem:[#allocation7 + $0x34] ss:$8 sps:$4 sm:$0xff]   ;;  %v4092_v14 = vld [vmem:[#allocation7 + $0x30] ss:$8 sps:$4 sm:$0xff]   ;;  %375 = vmatprep.mubr.bf16.mxu1 %v4445_v27 }
  0x74   :  { %v4093_v15 = vld [vmem:[#allocation7 + $0x44] ss:$8 sps:$4 sm:$0xff]   ;;  %v4079_v16 = vld [vmem:[#allocation5 + $0x30] sm:$0xff]   ;;  %v4095_v17 = vld [vmem:[#allocation7 + $0x40] ss:$8 sps:$4 sm:$0xff]  }
  0x75   :  { %4014 = vmatpush3.bf16.msra.mxu0 %v4074_v2  ;;  %v4096_v18 = vld [vmem:[#allocation7 + $0x54] ss:$8 sps:$4 sm:$0xff]   ;;  %v4098_v21 = vld [vmem:[#allocation7 + $0x50] ss:$8 sps:$4 sm:$0xff]   ;;  %v4099_v22 = vld [vmem:[#allocation7 + $0x64] ss:$8 sps:$4 sm:$0xff]  }
  0x76   :  { %4015 = vmatprep.subr.bf16.mxu0 %v4443_v0  ;;  %346 = vmatpush1.bf16.msra.mxu1 %v4086_v8  ;;  %v4080_v19 = vld [vmem:[#allocation5 + $0x38] sm:$0xff]   ;;  %v4101_v24 = vld [vmem:[#allocation7 + $0x60] ss:$8 sps:$4 sm:$0xff]   ;;  %v4107_v29 = vld [vmem:[#allocation8 + $0x4] ss:$16 sps:$4 sm:$0xff]  }
  0x77   :  { %347 = vmatprep.subr.bf16.mxu1 %v4087_v9  ;;  %v120_v20 = vld [vmem:[#allocation2] sm:$0xff]  ;;  %v4105_v28 = vld [vmem:[#allocation8] ss:$16 sps:$4 sm:$0xff]   ;;  %v4113_v31 = vld [vmem:[#allocation8 + $0x24] ss:$16 sps:$4 sm:$0xff]  }
  0x78   :  { %v121_v23 = vpack.c.bf16 %v120_v20, %v120_v20  ;;  %v4102_v25 = vld [vmem:[#allocation7 + $0x74] ss:$8 sps:$4 sm:$0xff]   ;;  %v4104_v26 = vld [vmem:[#allocation7 + $0x70] ss:$8 sps:$4 sm:$0xff]  }
  0x79   :  { %4016 = vmatpush3.bf16.msra.mxu0 %v4075_v3  ;;  %v4110_v30 = vld [vmem:[#allocation8 + $0xc] ss:$16 sps:$4 sm:$0xff]   ;;  %v4111_v32 = vld [vmem:[#allocation8 + $0x20] ss:$16 sps:$4 sm:$0xff]   ;;  %v4119_v33 = vld [vmem:[#allocation8 + $0x44] ss:$16 sps:$4 sm:$0xff]  }
  0x7a   :  { %4017 = vmatprep.subr.bf16.mxu0 %v4443_v0  ;;  %348 = vmatpush1.bf16.msra.mxu1 %v4089_v11  ;;  %v4117_v34 = vld [vmem:[#allocation8 + $0x40] ss:$16 sps:$4 sm:$0xff]   ;;  %v4125_v35 = vld [vmem:[#allocation8 + $0x64] ss:$16 sps:$4 sm:$0xff]   ;;  %v3504_v57 = vld [vmem:[%s4692_s2] ss:$0 sm:$0xff] }
  0x7b   :  { %349 = vmatprep.subr.bf16.mxu1 %v4090_v13  ;;  %v4123_v36 = vld [vmem:[#allocation8 + $0x60] ss:$16 sps:$4 sm:$0xff]   ;;  %v4131_v37 = vld [vmem:[#allocation8 + $0x84] ss:$16 sps:$4 sm:$0xff]   ;;  %v4116_v2 = vld [vmem:[#allocation8 + $0x2c] ss:$16 sps:$4 sm:$0xff]  }
  0x7c   :  { %v4129_v38 = vld [vmem:[#allocation8 + $0x80] ss:$16 sps:$4 sm:$0xff]   ;;  %v4137_v39 = vld [vmem:[#allocation8 + $0xa4] ss:$16 sps:$4 sm:$0xff]   ;;  %v4114_v3 = vld [vmem:[#allocation8 + $0x28] ss:$16 sps:$4 sm:$0xff]  }
  0x7d   :  { %4018 = vmatpush3.bf16.msra.mxu0 %v4076_v6  ;;  %v4135_v40 = vld [vmem:[#allocation8 + $0xa0] ss:$16 sps:$4 sm:$0xff]   ;;  %v4143_v41 = vld [vmem:[#allocation8 + $0xc4] ss:$16 sps:$4 sm:$0xff]   ;;  %v4122_v4 = vld [vmem:[#allocation8 + $0x4c] ss:$16 sps:$4 sm:$0xff]  }
  0x7e   :  { %4019 = vmatprep.subr.bf16.mxu0 %v4443_v0  ;;  %350 = vmatpush1.bf16.msra.mxu1 %v4092_v14  ;;  %v4141_v42 = vld [vmem:[#allocation8 + $0xc0] ss:$16 sps:$4 sm:$0xff]   ;;  %v4149_v43 = vld [vmem:[#allocation8 + $0xe4] ss:$16 sps:$4 sm:$0xff]   ;;  %v4120_v5 = vld [vmem:[#allocation8 + $0x48] ss:$16 sps:$4 sm:$0xff]  }
  0x7f   :  { %351 = vmatprep.subr.bf16.mxu1 %v4093_v15  ;;  %v4147_v44 = vld [vmem:[#allocation8 + $0xe0] ss:$16 sps:$4 sm:$0xff]   ;;  %v4155_v45 = vld [vmem:[#allocation8 + $0x104] ss:$16 sps:$4 sm:$0xff]   ;;  %v4128_v6 = vld [vmem:[#allocation8 + $0x6c] ss:$16 sps:$4 sm:$0xff]  }
  0x80   :  { %v4153_v46 = vld [vmem:[#allocation8 + $0x100] ss:$16 sps:$4 sm:$0xff]   ;;  %v4161_v47 = vld [vmem:[#allocation8 + $0x124] ss:$16 sps:$4 sm:$0xff]   ;;  %v4126_v7 = vld [vmem:[#allocation8 + $0x68] ss:$16 sps:$4 sm:$0xff]  }
  0x81   :  { %4020 = vmatpush3.bf16.msra.mxu0 %v4077_v10  ;;  %v4159_v48 = vld [vmem:[#allocation8 + $0x120] ss:$16 sps:$4 sm:$0xff]   ;;  %v4167_v49 = vld [vmem:[#allocation8 + $0x144] ss:$16 sps:$4 sm:$0xff]   ;;  %v4134_v8 = vld [vmem:[#allocation8 + $0x8c] ss:$16 sps:$4 sm:$0xff]  }
  0x82   :  { %4021 = vmatprep.subr.bf16.mxu0 %v4443_v0  ;;  %352 = vmatpush1.bf16.msra.mxu1 %v4095_v17  ;;  %v4165_v50 = vld [vmem:[#allocation8 + $0x140] ss:$16 sps:$4 sm:$0xff]   ;;  %v4173_v51 = vld [vmem:[#allocation8 + $0x164] ss:$16 sps:$4 sm:$0xff]   ;;  %v4132_v9 = vld [vmem:[#allocation8 + $0x88] ss:$16 sps:$4 sm:$0xff]  }
  0x83   :  { %353 = vmatprep.subr.bf16.mxu1 %v4096_v18  ;;  %v4171_v52 = vld [vmem:[#allocation8 + $0x160] ss:$16 sps:$4 sm:$0xff]   ;;  %v4179_v53 = vld [vmem:[#allocation8 + $0x184] ss:$16 sps:$4 sm:$0xff]   ;;  %v4140_v10 = vld [vmem:[#allocation8 + $0xac] ss:$16 sps:$4 sm:$0xff]  }
  0x84   :  { %v4177_v54 = vld [vmem:[#allocation8 + $0x180] ss:$16 sps:$4 sm:$0xff]   ;;  %v4185_v55 = vld [vmem:[#allocation8 + $0x1a4] ss:$16 sps:$4 sm:$0xff]   ;;  %v4138_v11 = vld [vmem:[#allocation8 + $0xa8] ss:$16 sps:$4 sm:$0xff]  }
  0x85   :  { %4022 = vmatpush3.bf16.msra.mxu0 %v4078_v12  ;;  %v4183_v56 = vld [vmem:[#allocation8 + $0x1a0] ss:$16 sps:$4 sm:$0xff]   ;;  %v4146_v12 = vld [vmem:[#allocation8 + $0xcc] ss:$16 sps:$4 sm:$0xff]   ;;  %v4144_v13 = vld [vmem:[#allocation8 + $0xc8] ss:$16 sps:$4 sm:$0xff]  }
  0x86   :  { %4023 = vmatprep.subr.bf16.mxu0 %v4443_v0  ;;  %354 = vmatpush1.bf16.msra.mxu1 %v4098_v21  ;;  %v4152_v14 = vld [vmem:[#allocation8 + $0xec] ss:$16 sps:$4 sm:$0xff]   ;;  %v4150_v15 = vld [vmem:[#allocation8 + $0xe8] ss:$16 sps:$4 sm:$0xff]  }
  0x87   :  { %355 = vmatprep.subr.bf16.mxu1 %v4099_v22  ;;  %v4156_v17 = vld [vmem:[#allocation8 + $0x108] ss:$16 sps:$4 sm:$0xff]   ;;  %v4164_v18 = vld [vmem:[#allocation8 + $0x12c] ss:$16 sps:$4 sm:$0xff]  }
  0x88   :  { %v4170_v20 = vld [vmem:[#allocation8 + $0x14c] ss:$16 sps:$4 sm:$0xff]   ;;  %v4168_v21 = vld [vmem:[#allocation8 + $0x148] ss:$16 sps:$4 sm:$0xff]  }
  0x89   :  { %4024 = vmatpush3.bf16.msra.mxu0 %v4079_v16  ;;  %v4158_v16 = vld [vmem:[#allocation8 + $0x10c] ss:$16 sps:$4 sm:$0xff]   ;;  %v4186_v27 = vld [vmem:[#allocation8 + $0x1a8] ss:$16 sps:$4 sm:$0xff]  }
  0x8a   :  { %4025 = vmatprep.subr.bf16.mxu0 %v4443_v0  ;;  %356 = vmatpush1.bf16.msra.mxu1 %v4101_v24  ;;  %v4108_v0 = vld [vmem:[#allocation8 + $0x8] ss:$16 sps:$4 sm:$0xff]   ;;  %v4176_v22 = vld [vmem:[#allocation8 + $0x16c] ss:$16 sps:$4 sm:$0xff]  }
  0x8b   :  { %357 = vmatprep.subr.bf16.mxu1 %v4102_v25  ;;  %v4182_v24 = vld [vmem:[#allocation8 + $0x18c] ss:$16 sps:$4 sm:$0xff]   ;;  %v4180_v25 = vld [vmem:[#allocation8 + $0x188] ss:$16 sps:$4 sm:$0xff]  }
  0x8d   :  { %4026 = vmatpush3.bf16.msra.mxu0 %v4080_v19  ;;  %v4162_v19 = vld [vmem:[#allocation8 + $0x128] ss:$16 sps:$4 sm:$0xff]  }
  0x8e   :  { %358 = vmatpush1.bf16.msra.mxu1 %v4104_v26  ;;  %794 = vmatprep.subr.bf16.mxu0 %v4107_v29  ;;  %v4188_v26 = vld [vmem:[#allocation8 + $0x1ac] ss:$16 sps:$4 sm:$0xff]  }
  0x8f   :  { %835 = vmatprep.subr.bf16.mxu1 %v4110_v30  ;;  %v4194_v29 = vld [vmem:[#allocation8 + $0x1cc] ss:$16 sps:$4 sm:$0xff]   ;;  %v4189_v30 = vld [vmem:[#allocation8 + $0x1c0] ss:$16 sps:$4 sm:$0xff]  }
  0x90   :  { %4028 = vmatmul.mubr.bf16.vlgmr.msra.gmra.mrb[0].mxu0 %v121_v23  ;;  %v4174_v23 = vld [vmem:[#allocation8 + $0x168] ss:$16 sps:$4 sm:$0xff]  }
  0x91   :  { %795 = vmatpush1.bf16.msra.mxu0 %v4105_v28  ;;  %v4191_v28 = vld [vmem:[#allocation8 + $0x1c4] ss:$16 sps:$4 sm:$0xff]  }
  0x92   :  { %796 = vmatprep.subr.bf16.mxu0 %v4113_v31  ;;  %v4192_v31 = vld [vmem:[#allocation8 + $0x1c8] ss:$16 sps:$4 sm:$0xff]  }
  0x95   :  { %797 = vmatpush1.bf16.msra.mxu0 %v4111_v32  ;;  %v4197_v32 = vld [vmem:[#allocation8 + $0x1e4] ss:$16 sps:$4 sm:$0xff]  }
  0x96   :  { %798 = vmatprep.subr.bf16.mxu0 %v4119_v33  ;;  %v4200_v33 = vld [vmem:[#allocation8 + $0x1ec] ss:$16 sps:$4 sm:$0xff]  }
  0x99   :  { %799 = vmatpush1.bf16.msra.mxu0 %v4117_v34  ;;  %v4195_v34 = vld [vmem:[#allocation8 + $0x1e0] ss:$16 sps:$4 sm:$0xff]  }
  0x9a   :  { %800 = vmatprep.subr.bf16.mxu0 %v4125_v35  ;;  %v4198_v35 = vld [vmem:[#allocation8 + $0x1e8] ss:$16 sps:$4 sm:$0xff]  }
  0x9d   :  { %801 = vmatpush1.bf16.msra.mxu0 %v4123_v36  ;;  %v884_v36 = vld [vmem:[#allocation10] sm:$0xff] }
  0x9e   :  { %802 = vmatprep.subr.bf16.mxu0 %v4131_v37  ;;  %v888_v37 = vld [vmem:[#allocation10 + $0x20] sm:$0xff] }
  0xa1   :  { %803 = vmatpush1.bf16.msra.mxu0 %v4129_v38  ;;  %v885_v38 = vld [vmem:[#allocation10 + $0x8] sm:$0xff] }
  0xa2   :  { %804 = vmatprep.subr.bf16.mxu0 %v4137_v39  ;;  %v3593_v39 = vcombine.low %v884_v36, %v888_v37 }
  0xa5   :  { %805 = vmatpush1.bf16.msra.mxu0 %v4135_v40  ;;  %v3594_v40 = vcombine.high %v884_v36, %v888_v37  ;;  %v936_v36 = vld [vmem:[#allocation10 + $0x1a0] sm:$0xff]  ;;  %v933_v37 = vld [vmem:[#allocation10 + $0x188] sm:$0xff] }
  0xa6   :  { %806 = vmatprep.subr.bf16.mxu0 %v4143_v41  ;;  %v889_v41 = vld [vmem:[#allocation10 + $0x28] sm:$0xff] }
  0xa9   :  { %807 = vmatpush1.bf16.msra.mxu0 %v4141_v42  ;;  %v3595_v42 = vcombine.low %v885_v38, %v889_v41 }
  0xaa   :  { %808 = vmatprep.subr.bf16.mxu0 %v4149_v43  ;;  %v3596_v43 = vcombine.high %v885_v38, %v889_v41  ;;  %v937_v38 = vld [vmem:[#allocation10 + $0x1a8] sm:$0xff] }
  0xad   :  { %809 = vmatpush1.bf16.msra.mxu0 %v4147_v44  ;;  %v253_v44 = vlaneseq }
  0xae   :  { %810 = vmatprep.subr.bf16.mxu0 %v4155_v45 }
  0xaf   :  { %v4595_v45 = vshrl.u32 %v253_v44, 7  ;;  %v944_v44 = vld [vmem:[#allocation10 + $0x1e0] sm:$0xff] }
  0xb1   :  { %811 = vmatpush1.bf16.msra.mxu0 %v4153_v46  ;;  %v4598_v46 = vsub.s32 0, %v4595_v45 }
  0xb2   :  { %812 = vmatprep.subr.bf16.mxu0 %v4161_v47  ;;  %v251_v47 = vld [vmem:[%s4694_s4] sm:$0x3] }
  0xb5   :  { %813 = vmatpush1.bf16.msra.mxu0 %v4159_v48  ;;  %v4604_v48 = vsub.s32 1, %v4595_v45 }
  0xb6   :  { %814 = vmatprep.subr.bf16.mxu0 %v4167_v49  ;;  %v256_v49 = vrot.slane %v251_v47, %v4598_v46 }
  0xb9   :  { %815 = vmatpush1.bf16.msra.mxu0 %v4165_v50  ;;  %v260_v50 = vrot.slane %v251_v47, %v4604_v48  ;;  %v941_v47 = vld [vmem:[#allocation10 + $0x1c8] sm:$0xff] }
  0xba   :  { %816 = vmatprep.subr.bf16.mxu0 %v4173_v51 }
  0xbd   :  { %817 = vmatpush1.bf16.msra.mxu0 %v4171_v52 }
  0xbe   :  { %818 = vmatprep.subr.bf16.mxu0 %v4179_v53 }
  0xc1   :  { %819 = vmatpush1.bf16.msra.mxu0 %v4177_v54 }
  0xc2   :  { %820 = vmatprep.subr.bf16.mxu0 %v4185_v55 }
  0xc5   :  { %821 = vmatpush1.bf16.msra.mxu0 %v4183_v56 }
  0xc6   :  { %822 = vmatprep.subr.bf16.mxu0 %v4191_v28  ;;  %v928_v28 = vld [vmem:[#allocation10 + $0x160] sm:$0xff] }
  0xc9   :  { %823 = vmatpush1.bf16.msra.mxu0 %v4189_v30  ;;  %v929_v30 = vld [vmem:[#allocation10 + $0x168] sm:$0xff] }
  0xca   :  { %824 = vmatprep.subr.bf16.mxu0 %v4197_v32 }
  0xcd   :  { %825 = vmatpush1.bf16.msra.mxu0 %v4195_v34 }
  0xce   :  { %2462 = vmatprep.subr.bf16.mxu0 %v3594_v40 }
 0x163   :  { %v227_v58 = vpop.f32.mrb[0].mxu0 }
 0x164   :  { %v228_v59 = vadd.f32 %v3504_v57, %v227_v58  ;;  %v4029_v60 = vpop.f32.mrb[1].mxu0  ;;  %v892_v58 = vld [vmem:[#allocation10 + $0x40] sm:$0xff] }
 0x165   :  { %v230_v61 = vpop.f32.mrb[2].mxu0  ;;  %v896_v60 = vld [vmem:[#allocation10 + $0x60] sm:$0xff] }
 0x166   :  { %v233_v62 = vmax.f32 %v228_v59, 0.0  ;;  %v4030_v63 = vpop.f32.mrb[3].mxu0  ;;  %v893_v61 = vld [vmem:[#allocation10 + $0x48] sm:$0xff] }
 0x168   :  { %v234_v1 = vpack.c.bf16 %v233_v62, %v233_v62  ;;  %v897_v62 = vld [vmem:[#allocation10 + $0x68] sm:$0xff] }
 0x16a   :  { %376 = vmatmul.mubr.bf16.vlgmr.msra.gmra.mrb[0].mxu1 %v234_v1  ;;  %v3602_v1 = vcombine.high %v892_v58, %v896_v60 }
 0x16b   :  { %836 = vmatpush1.bf16.msra.mxu1 %v4108_v0 }
 0x16c   :  { %837 = vmatprep.subr.bf16.mxu1 %v4116_v2  ;;  %v3604_v2 = vcombine.high %v893_v61, %v897_v62 }
 0x16f   :  { %838 = vmatpush1.bf16.msra.mxu1 %v4114_v3  ;;  %v900_v3 = vld [vmem:[#allocation10 + $0x80] sm:$0xff] }
 0x170   :  { %839 = vmatprep.subr.bf16.mxu1 %v4122_v4  ;;  %v904_v4 = vld [vmem:[#allocation10 + $0xa0] sm:$0xff] }
 0x173   :  { %840 = vmatpush1.bf16.msra.mxu1 %v4120_v5  ;;  %v901_v5 = vld [vmem:[#allocation10 + $0x88] sm:$0xff] }
 0x174   :  { %841 = vmatprep.subr.bf16.mxu1 %v4128_v6  ;;  %v905_v6 = vld [vmem:[#allocation10 + $0xa8] sm:$0xff] }
 0x177   :  { %842 = vmatpush1.bf16.msra.mxu1 %v4126_v7  ;;  %v3601_v7 = vcombine.low %v892_v58, %v896_v60 }
 0x178   :  { %843 = vmatprep.subr.bf16.mxu1 %v4134_v8  ;;  %v3603_v8 = vcombine.low %v893_v61, %v897_v62  ;;  %v956_v62 = vld [vmem:[#allocation10 + $0x240] sm:$0xff] }
 0x17b   :  { %844 = vmatpush1.bf16.msra.mxu1 %v4132_v9  ;;  %v3610_v9 = vcombine.high %v900_v3, %v904_v4 }
 0x17c   :  { %845 = vmatprep.subr.bf16.mxu1 %v4140_v10  ;;  %v3612_v10 = vcombine.high %v901_v5, %v905_v6 }
 0x17f   :  { %846 = vmatpush1.bf16.msra.mxu1 %v4138_v11  ;;  %v908_v11 = vld [vmem:[#allocation10 + $0xc0] sm:$0xff] }
 0x180   :  { %847 = vmatprep.subr.bf16.mxu1 %v4146_v12  ;;  %v912_v12 = vld [vmem:[#allocation10 + $0xe0] sm:$0xff] }
 0x183   :  { %848 = vmatpush1.bf16.msra.mxu1 %v4144_v13  ;;  %v909_v13 = vld [vmem:[#allocation10 + $0xc8] sm:$0xff] }
 0x184   :  { %849 = vmatprep.subr.bf16.mxu1 %v4152_v14  ;;  %v913_v14 = vld [vmem:[#allocation10 + $0xe8] sm:$0xff] }
 0x187   :  { %850 = vmatpush1.bf16.msra.mxu1 %v4150_v15  ;;  %v3609_v15 = vcombine.low %v900_v3, %v904_v4 }
 0x188   :  { %851 = vmatprep.subr.bf16.mxu1 %v4158_v16  ;;  %v3611_v16 = vcombine.low %v901_v5, %v905_v6  ;;  %v964_v6 = vld [vmem:[#allocation10 + $0x280] sm:$0xff] }
 0x18b   :  { %852 = vmatpush1.bf16.msra.mxu1 %v4156_v17  ;;  %v3618_v17 = vcombine.high %v908_v11, %v912_v12 }
 0x18c   :  { %853 = vmatprep.subr.bf16.mxu1 %v4164_v18  ;;  %v3620_v18 = vcombine.high %v909_v13, %v913_v14 }
 0x18f   :  { %854 = vmatpush1.bf16.msra.mxu1 %v4162_v19  ;;  %v916_v19 = vld [vmem:[#allocation10 + $0x100] sm:$0xff] }
 0x190   :  { %855 = vmatprep.subr.bf16.mxu1 %v4170_v20  ;;  %v920_v20 = vld [vmem:[#allocation10 + $0x120] sm:$0xff] }
 0x193   :  { %856 = vmatpush1.bf16.msra.mxu1 %v4168_v21  ;;  %v917_v21 = vld [vmem:[#allocation10 + $0x108] sm:$0xff] }
 0x194   :  { %857 = vmatprep.subr.bf16.mxu1 %v4176_v22  ;;  %v921_v22 = vld [vmem:[#allocation10 + $0x128] sm:$0xff] }
 0x195   :  { %v3627_v32 = vcombine.low %v917_v21, %v921_v22 }
 0x197   :  { %858 = vmatpush1.bf16.msra.mxu1 %v4174_v23  ;;  %v3617_v23 = vcombine.low %v908_v11, %v912_v12 }
 0x198   :  { %859 = vmatprep.subr.bf16.mxu1 %v4182_v24  ;;  %v3619_v24 = vcombine.low %v909_v13, %v913_v14  ;;  %v972_v14 = vld [vmem:[#allocation10 + $0x2c0] sm:$0xff] }
 0x19b   :  { %860 = vmatpush1.bf16.msra.mxu1 %v4180_v25  ;;  %v3626_v25 = vcombine.high %v916_v19, %v920_v20 }
 0x19c   :  { %861 = vmatprep.subr.bf16.mxu1 %v4188_v26  ;;  %v3628_v26 = vcombine.high %v917_v21, %v921_v22  ;;  %v980_v22 = vld [vmem:[#allocation10 + $0x300] sm:$0xff] }
 0x19f   :  { %862 = vmatpush1.bf16.msra.mxu1 %v4186_v27  ;;  %v924_v27 = vld [vmem:[#allocation10 + $0x140] sm:$0xff] }
 0x1a0   :  { %863 = vmatprep.subr.bf16.mxu1 %v4194_v29  ;;  %v925_v29 = vld [vmem:[#allocation10 + $0x148] sm:$0xff] }
 0x1a1   :  { %v3636_v34 = vcombine.high %v925_v29, %v929_v30  ;;  %v3635_v40 = vcombine.low %v925_v29, %v929_v30  ;;  %v988_v30 = vld [vmem:[#allocation10 + $0x340] sm:$0xff] }
 0x1a3   :  { %864 = vmatpush1.bf16.msra.mxu1 %v4192_v31  ;;  %v3625_v31 = vcombine.low %v916_v19, %v920_v20 }
 0x1a4   :  { %865 = vmatprep.subr.bf16.mxu1 %v4200_v33  ;;  %v3634_v33 = vcombine.high %v924_v27, %v928_v28 }
 0x1a7   :  { %866 = vmatpush1.bf16.msra.mxu1 %v4198_v35  ;;  %v932_v35 = vld [vmem:[#allocation10 + $0x180] sm:$0xff] }
 0x1a8   :  { %2544 = vmatprep.subr.bf16.mxu1 %v3596_v43  ;;  %v3642_v41 = vcombine.high %v932_v35, %v936_v36  ;;  %v940_v43 = vld [vmem:[#allocation10 + $0x1c0] sm:$0xff] }
 0x1a9   :  { %v3649_v58 = vcombine.low %v940_v43, %v944_v44 }
 0x23d   :  { %v377_v51 = vpop.f32.mrb[0].mxu1 }
 0x23e   :  { %v378_v52 = vadd.f32 %v377_v51, %v256_v49  ;;  %v379_v53 = vpop.f32.mrb[1].mxu1  ;;  %v945_v49 = vld [vmem:[#allocation10 + $0x1e8] sm:$0xff]  ;;  %v3643_v51 = vcombine.low %v933_v37, %v937_v38 }
 0x23f   :  { %v380_v54 = vadd.f32 %v379_v53, %v260_v50  ;;  %v381_v55 = vpop.f32.mrb[2].mxu1  ;;  %v3641_v50 = vcombine.low %v932_v35, %v936_v36  ;;  %v3652_v53 = vcombine.high %v941_v47, %v945_v49 }
 0x240   :  { %v384_v56 = vmax.f32 %v378_v52, 0.0  ;;  %v382_v57 = vpop.f32.mrb[3].mxu1  ;;  %v3650_v52 = vcombine.high %v940_v43, %v944_v44  ;;  %v952_v55 = vld [vmem:[#allocation10 + $0x220] sm:$0xff]  ;;  %v1001_v44 = vld [vmem:[#allocation10 + $0x3a8] sm:$0xff] }
 0x241   :  { %v385_v59 = vmax.f32 %v380_v54, 0.0  ;;  %v948_v54 = vld [vmem:[#allocation10 + $0x200] sm:$0xff]  ;;  %v953_v57 = vld [vmem:[#allocation10 + $0x228] sm:$0xff] }
 0x242   :  { %v386_v0 = vpack.c.bf16 %v384_v56, %v384_v56  ;;  %v949_v56 = vld [vmem:[#allocation10 + $0x208] sm:$0xff]  ;;  %v3658_v60 = vcombine.high %v948_v54, %v952_v55 }
 0x243   :  { %v387_v63 = vpack.c.bf16 %v385_v59, %v385_v59  ;;  %v3651_v59 = vcombine.low %v941_v47, %v945_v49  ;;  %v3660_v61 = vcombine.high %v949_v56, %v953_v57  ;;  %v3659_v3 = vcombine.low %v949_v56, %v953_v57 }
 0x245   :  { %826 = vmatprep.mubr.bf16.mxu0 %v387_v63  ;;  %867 = vmatprep.mubr.bf16.mxu1 %v387_v63  ;;  %v960_v63 = vld [vmem:[#allocation10 + $0x260] sm:$0xff] }
 0x246   :  { %827 = vmatmul.mubr.bf16.vlgmr.msra.gmra.mrb[4].mxu0 %v386_v0  ;;  %868 = vmatmul.mubr.bf16.vlgmr.msra.gmra.mrb[4].mxu1 %v386_v0  ;;  %v957_v0 = vld [vmem:[#allocation10 + $0x248] sm:$0xff]  ;;  %v3666_v4 = vcombine.high %v956_v62, %v960_v63 }
 0x247   :  { %2463 = vmatpush1.bf16.msra.mxu0 %v3593_v39  ;;  %2545 = vmatpush1.bf16.msra.mxu1 %v3595_v42  ;;  %v3633_v39 = vcombine.low %v924_v27, %v928_v28  ;;  %v3644_v42 = vcombine.high %v933_v37, %v937_v38 }
 0x248   :  { %2464 = vmatprep.subr.bf16.mxu0 %v3602_v1  ;;  %2546 = vmatprep.subr.bf16.mxu1 %v3604_v2  ;;  %v961_v1 = vld [vmem:[#allocation10 + $0x268] sm:$0xff]  ;;  %v3657_v2 = vcombine.low %v948_v54, %v952_v55 }
 0x249   :  { %v3668_v5 = vcombine.high %v957_v0, %v961_v1  ;;  %v3667_v11 = vcombine.low %v957_v0, %v961_v1  ;;  %v1009_v55 = vld [vmem:[#allocation10 + $0x3e8] sm:$0xff] }
 0x24b   :  { %2465 = vmatpush1.bf16.msra.mxu0 %v3601_v7  ;;  %2547 = vmatpush1.bf16.msra.mxu1 %v3603_v8  ;;  %v968_v7 = vld [vmem:[#allocation10 + $0x2a0] sm:$0xff]  ;;  %v965_v8 = vld [vmem:[#allocation10 + $0x288] sm:$0xff] }
 0x24c   :  { %2466 = vmatprep.subr.bf16.mxu0 %v3610_v9  ;;  %2548 = vmatprep.subr.bf16.mxu1 %v3612_v10  ;;  %v969_v9 = vld [vmem:[#allocation10 + $0x2a8] sm:$0xff]  ;;  %v3665_v10 = vcombine.low %v956_v62, %v960_v63  ;;  %v3674_v12 = vcombine.high %v964_v6, %v968_v7 }
 0x24d   :  { %v3676_v13 = vcombine.high %v965_v8, %v969_v9  ;;  %v3675_v19 = vcombine.low %v965_v8, %v969_v9  ;;  %v1017_v63 = vld [vmem:[#allocation10 + $0x428] sm:$0xff] }
 0x24f   :  { %2467 = vmatpush1.bf16.msra.mxu0 %v3609_v15  ;;  %2549 = vmatpush1.bf16.msra.mxu1 %v3611_v16  ;;  %v976_v15 = vld [vmem:[#allocation10 + $0x2e0] sm:$0xff]  ;;  %v973_v16 = vld [vmem:[#allocation10 + $0x2c8] sm:$0xff] }
 0x250   :  { %2468 = vmatprep.subr.bf16.mxu0 %v3618_v17  ;;  %2550 = vmatprep.subr.bf16.mxu1 %v3620_v18  ;;  %v977_v17 = vld [vmem:[#allocation10 + $0x2e8] sm:$0xff]  ;;  %v3673_v18 = vcombine.low %v964_v6, %v968_v7  ;;  %v3682_v20 = vcombine.high %v972_v14, %v976_v15 }
 0x251   :  { %v3684_v21 = vcombine.high %v973_v16, %v977_v17  ;;  %v3683_v27 = vcombine.low %v973_v16, %v977_v17 }
 0x253   :  { %2469 = vmatpush1.bf16.msra.mxu0 %v3617_v23  ;;  %2551 = vmatpush1.bf16.msra.mxu1 %v3619_v24  ;;  %v984_v23 = vld [vmem:[#allocation10 + $0x320] sm:$0xff]  ;;  %v981_v24 = vld [vmem:[#allocation10 + $0x308] sm:$0xff] }
 0x254   :  { %2470 = vmatprep.subr.bf16.mxu0 %v3626_v25  ;;  %2552 = vmatprep.subr.bf16.mxu1 %v3628_v26  ;;  %v985_v25 = vld [vmem:[#allocation10 + $0x328] sm:$0xff]  ;;  %v3681_v26 = vcombine.low %v972_v14, %v976_v15  ;;  %v3690_v28 = vcombine.high %v980_v22, %v984_v23 }
 0x255   :  { %v3692_v29 = vcombine.high %v981_v24, %v985_v25  ;;  %v3691_v35 = vcombine.low %v981_v24, %v985_v25  ;;  %v1021_v24 = vld [vmem:[#allocation10 + $0x448] sm:$0xff] }
 0x256   :  { %v1025_v25 = vld [vmem:[#allocation10 + $0x468] sm:$0xff] }
 0x257   :  { %2471 = vmatpush1.bf16.msra.mxu0 %v3625_v31  ;;  %2553 = vmatpush1.bf16.msra.mxu1 %v3627_v32  ;;  %v992_v31 = vld [vmem:[#allocation10 + $0x360] sm:$0xff]  ;;  %v989_v32 = vld [vmem:[#allocation10 + $0x348] sm:$0xff] }
 0x258   :  { %2472 = vmatprep.subr.bf16.mxu0 %v3634_v33  ;;  %2554 = vmatprep.subr.bf16.mxu1 %v3636_v34  ;;  %v993_v33 = vld [vmem:[#allocation10 + $0x368] sm:$0xff]  ;;  %v3689_v34 = vcombine.low %v980_v22, %v984_v23  ;;  %v3698_v36 = vcombine.high %v988_v30, %v992_v31  ;;  %v3697_v38 = vcombine.low %v988_v30, %v992_v31  ;;  %v1024_v23 = vld [vmem:[#allocation10 + $0x460] sm:$0xff] }
 0x259   :  { %v3700_v37 = vcombine.high %v989_v32, %v993_v33  ;;  %v3732_v30 = vcombine.high %v1021_v24, %v1025_v25  ;;  %v1032_v31 = vld [vmem:[#allocation10 + $0x4a0] sm:$0xff] }
 0x25b   :  { %2473 = vmatpush1.bf16.msra.mxu0 %v3633_v39  ;;  %2555 = vmatpush1.bf16.msra.mxu1 %v3635_v40  ;;  %v3699_v39 = vcombine.low %v989_v32, %v993_v33  ;;  %v996_v40 = vld [vmem:[#allocation10 + $0x380] sm:$0xff]  ;;  %v1029_v32 = vld [vmem:[#allocation10 + $0x488] sm:$0xff] }
 0x25c   :  { %2474 = vmatprep.subr.bf16.mxu0 %v3642_v41  ;;  %2556 = vmatprep.subr.bf16.mxu1 %v3644_v42  ;;  %v1000_v41 = vld [vmem:[#allocation10 + $0x3a0] sm:$0xff]  ;;  %v997_v42 = vld [vmem:[#allocation10 + $0x388] sm:$0xff] }
 0x25d   :  { %v3706_v43 = vcombine.high %v996_v40, %v1000_v41  ;;  %v3705_v47 = vcombine.low %v996_v40, %v1000_v41  ;;  %v3707_v49 = vcombine.low %v997_v42, %v1001_v44  ;;  %v1033_v33 = vld [vmem:[#allocation10 + $0x4a8] sm:$0xff]  ;;  %v1040_v40 = vld [vmem:[#allocation10 + $0x4e0] sm:$0xff] }
 0x25e   :  { %v1037_v41 = vld [vmem:[#allocation10 + $0x4c8] sm:$0xff] }
 0x25f   :  { %2475 = vmatpush1.bf16.msra.mxu0 %v3641_v50  ;;  %2557 = vmatpush1.bf16.msra.mxu1 %v3643_v51  ;;  %v3708_v50 = vcombine.high %v997_v42, %v1001_v44  ;;  %v1004_v51 = vld [vmem:[#allocation10 + $0x3c0] sm:$0xff]  ;;  %v1041_v42 = vld [vmem:[#allocation10 + $0x4e8] sm:$0xff]  ;;  %v3739_v44 = vcombine.low %v1029_v32, %v1033_v33 }
 0x260   :  { %2476 = vmatprep.subr.bf16.mxu0 %v3650_v52  ;;  %2558 = vmatprep.subr.bf16.mxu1 %v3652_v53  ;;  %v1008_v52 = vld [vmem:[#allocation10 + $0x3e0] sm:$0xff]  ;;  %v1005_v53 = vld [vmem:[#allocation10 + $0x3c8] sm:$0xff] }
 0x261   :  { %v3714_v54 = vcombine.high %v1004_v51, %v1008_v52  ;;  %v3713_v56 = vcombine.low %v1004_v51, %v1008_v52  ;;  %v3715_v57 = vcombine.low %v1005_v53, %v1009_v55  ;;  %v1048_v51 = vld [vmem:[#allocation10 + $0x520] sm:$0xff]  ;;  %v1045_v52 = vld [vmem:[#allocation10 + $0x508] sm:$0xff] }
 0x263   :  { %2477 = vmatpush1.bf16.msra.mxu0 %v3649_v58  ;;  %2559 = vmatpush1.bf16.msra.mxu1 %v3651_v59  ;;  %v3716_v58 = vcombine.high %v1005_v53, %v1009_v55  ;;  %v1012_v59 = vld [vmem:[#allocation10 + $0x400] sm:$0xff]  ;;  %v1049_v53 = vld [vmem:[#allocation10 + $0x528] sm:$0xff]  ;;  %v3747_v55 = vcombine.low %v1037_v41, %v1041_v42 }
 0x264   :  { %2478 = vmatprep.subr.bf16.mxu0 %v3658_v60  ;;  %2560 = vmatprep.subr.bf16.mxu1 %v3660_v61  ;;  %v1016_v60 = vld [vmem:[#allocation10 + $0x420] sm:$0xff]  ;;  %v1013_v61 = vld [vmem:[#allocation10 + $0x408] sm:$0xff] }
 0x265   :  { %v3722_v62 = vcombine.high %v1012_v59, %v1016_v60  ;;  %v3721_v0 = vcombine.low %v1012_v59, %v1016_v60  ;;  %v3723_v1 = vcombine.low %v1013_v61, %v1017_v63  ;;  %v1056_v59 = vld [vmem:[#allocation10 + $0x560] sm:$0xff]  ;;  %v1053_v60 = vld [vmem:[#allocation10 + $0x548] sm:$0xff] }
 0x267   :  { %2479 = vmatpush1.bf16.msra.mxu0 %v3657_v2  ;;  %2561 = vmatpush1.bf16.msra.mxu1 %v3659_v3  ;;  %v3724_v2 = vcombine.high %v1013_v61, %v1017_v63  ;;  %v4611_v3 = vld [vmem:[%s4696_s6] sm:$0xf]  ;;  %v1057_v61 = vld [vmem:[#allocation10 + $0x568] sm:$0xff]  ;;  %v3755_v63 = vcombine.low %v1045_v52, %v1049_v53 }
 0x268   :  { %2480 = vmatprep.subr.bf16.mxu0 %v3666_v4  ;;  %2562 = vmatprep.subr.bf16.mxu1 %v3668_v5  ;;  %v468_v4 = vsub.s32 3, %v4595_v45  ;;  %v457_v5 = vrot.slane %v4611_v3, %v4598_v46  ;;  %v461_v6 = vrot.slane %v4611_v3, %v4604_v48 }
 0x26a   :  { %v469_v7 = vrot.slane %v4611_v3, %v468_v4 }
 0x26b   :  { %2481 = vmatpush1.bf16.msra.mxu0 %v3665_v10  ;;  %2563 = vmatpush1.bf16.msra.mxu1 %v3667_v11 }
 0x26c   :  { %2482 = vmatprep.subr.bf16.mxu0 %v3674_v12  ;;  %2564 = vmatprep.subr.bf16.mxu1 %v3676_v13 }
 0x26f   :  { %2483 = vmatpush1.bf16.msra.mxu0 %v3673_v18  ;;  %2565 = vmatpush1.bf16.msra.mxu1 %v3675_v19 }
 0x270   :  { %2484 = vmatprep.subr.bf16.mxu0 %v3682_v20  ;;  %2566 = vmatprep.subr.bf16.mxu1 %v3684_v21  ;;  %v1020_v21 = vld [vmem:[#allocation10 + $0x440] sm:$0xff] }
 0x273   :  { %2485 = vmatpush1.bf16.msra.mxu0 %v3681_v26  ;;  %2567 = vmatpush1.bf16.msra.mxu1 %v3683_v27 }
 0x274   :  { %2486 = vmatprep.subr.bf16.mxu0 %v3690_v28  ;;  %2568 = vmatprep.subr.bf16.mxu1 %v3692_v29  ;;  %v1028_v28 = vld [vmem:[#allocation10 + $0x480] sm:$0xff]  ;;  %v3730_v29 = vcombine.high %v1020_v21, %v1024_v23 }
 0x277   :  { %2487 = vmatpush1.bf16.msra.mxu0 %v3689_v34  ;;  %2569 = vmatpush1.bf16.msra.mxu1 %v3691_v35  ;;  %v3729_v35 = vcombine.low %v1020_v21, %v1024_v23  ;;  %v1076_v21 = vld [vmem:[#allocation10 + $0x600] sm:$0xff]  ;;  %v1077_v23 = vld [vmem:[#allocation10 + $0x608] sm:$0xff] }
 0x278   :  { %2488 = vmatprep.subr.bf16.mxu0 %v3698_v36  ;;  %2570 = vmatprep.subr.bf16.mxu1 %v3700_v37  ;;  %v3731_v36 = vcombine.low %v1021_v24, %v1025_v25  ;;  %v3738_v37 = vcombine.high %v1028_v28, %v1032_v31  ;;  %v1081_v24 = vld [vmem:[#allocation10 + $0x628] sm:$0xff] }
 0x27b   :  { %2489 = vmatpush1.bf16.msra.mxu0 %v3697_v38  ;;  %2571 = vmatpush1.bf16.msra.mxu1 %v3699_v39  ;;  %v3740_v38 = vcombine.high %v1029_v32, %v1033_v33  ;;  %v1036_v39 = vld [vmem:[#allocation10 + $0x4c0] sm:$0xff]  ;;  %v1085_v33 = vld [vmem:[#allocation10 + $0x648] sm:$0xff] }
 0x27c   :  { %2490 = vmatprep.subr.bf16.mxu0 %v3706_v43  ;;  %2572 = vmatprep.subr.bf16.mxu1 %v3708_v50  ;;  %v3737_v43 = vcombine.low %v1028_v28, %v1032_v31  ;;  %v1044_v50 = vld [vmem:[#allocation10 + $0x500] sm:$0xff] }
 0x27d   :  { %v1084_v31 = vld [vmem:[#allocation10 + $0x640] sm:$0xff] }
 0x27e   :  { %v1088_v32 = vld [vmem:[#allocation10 + $0x660] sm:$0xff] }
 0x27f   :  { %2491 = vmatpush1.bf16.msra.mxu0 %v3705_v47  ;;  %2573 = vmatpush1.bf16.msra.mxu1 %v3707_v49  ;;  %v3746_v47 = vcombine.high %v1036_v39, %v1040_v40  ;;  %v3748_v49 = vcombine.high %v1037_v41, %v1041_v42  ;;  %v1096_v41 = vld [vmem:[#allocation10 + $0x6a0] sm:$0xff]  ;;  %v1093_v42 = vld [vmem:[#allocation10 + $0x688] sm:$0xff] }
 0x280   :  { %2492 = vmatprep.subr.bf16.mxu0 %v3714_v54  ;;  %2574 = vmatprep.subr.bf16.mxu1 %v3716_v58  ;;  %v3745_v54 = vcombine.low %v1036_v39, %v1040_v40  ;;  %v1052_v58 = vld [vmem:[#allocation10 + $0x540] sm:$0xff] }
 0x281   :  { %v1092_v40 = vld [vmem:[#allocation10 + $0x680] sm:$0xff] }
 0x283   :  { %2493 = vmatpush1.bf16.msra.mxu0 %v3713_v56  ;;  %2575 = vmatpush1.bf16.msra.mxu1 %v3715_v57  ;;  %v3754_v56 = vcombine.high %v1044_v50, %v1048_v51  ;;  %v3756_v57 = vcombine.high %v1045_v52, %v1049_v53  ;;  %v1104_v52 = vld [vmem:[#allocation10 + $0x6e0] sm:$0xff]  ;;  %v1101_v53 = vld [vmem:[#allocation10 + $0x6c8] sm:$0xff] }
 0x284   :  { %2503 = vmatprep.subr.bf16.mxu0 %v3722_v62  ;;  %2585 = vmatprep.subr.bf16.mxu1 %v3724_v2  ;;  %v3753_v62 = vcombine.low %v1044_v50, %v1048_v51  ;;  %v1060_v2 = vld [vmem:[#allocation10 + $0x580] sm:$0xff] }
 0x285   :  { %v1100_v51 = vld [vmem:[#allocation10 + $0x6c0] sm:$0xff] }
 0x319   :  { %v828_v8 = vpop.f32.mrb[4].mxu0  ;;  %v4621_v9 = vpop.f32.mrb[4].mxu1 }
 0x31a   :  { %v829_v10 = vadd.f32 %v828_v8, %v457_v5  ;;  %v830_v11 = vpop.f32.mrb[5].mxu0  ;;  %v871_v12 = vpop.f32.mrb[5].mxu1  ;;  %v1064_v5 = vld [vmem:[#allocation10 + $0x5a0] sm:$0xff]  ;;  %v3761_v8 = vcombine.low %v1052_v58, %v1056_v59 }
 0x31b   :  { %v831_v13 = vadd.f32 %v830_v11, %v461_v6  ;;  %v872_v14 = vadd.f32 %v871_v12, %v469_v7  ;;  %v832_v15 = vpop.f32.mrb[6].mxu0  ;;  %v873_v16 = vpop.f32.mrb[6].mxu1  ;;  %v1061_v6 = vld [vmem:[#allocation10 + $0x588] sm:$0xff]  ;;  %v3770_v11 = vcombine.high %v1060_v2, %v1064_v5 }
 0x31c   :  { %v876_v17 = vmax.f32 %v829_v10, 0.0  ;;  %v833_v18 = vpop.f32.mrb[7].mxu0  ;;  %v874_v19 = vpop.f32.mrb[7].mxu1  ;;  %v1065_v7 = vld [vmem:[#allocation10 + $0x5a8] sm:$0xff]  ;;  %v3763_v10 = vcombine.low %v1053_v60, %v1057_v61 }
 0x31d   :  { %v877_v20 = vmax.f32 %v831_v13, 0.0  ;;  %v879_v22 = vmax.f32 %v872_v14, 0.0  ;;  %v3772_v12 = vcombine.high %v1061_v6, %v1065_v7  ;;  %v1068_v13 = vld [vmem:[#allocation10 + $0x5c0] sm:$0xff]  ;;  %v1069_v15 = vld [vmem:[#allocation10 + $0x5c8] sm:$0xff]  ;;  %v3771_v18 = vcombine.low %v1061_v6, %v1065_v7 }
 0x31e   :  { %v4625_v27 = vpack.c.bf16 %v876_v17, %v876_v17  ;;  %v1072_v14 = vld [vmem:[#allocation10 + $0x5e0] sm:$0xff]  ;;  %v1073_v16 = vld [vmem:[#allocation10 + $0x5e8] sm:$0xff]  ;;  %v3769_v17 = vcombine.low %v1060_v2, %v1064_v5 }
 0x31f   :  { %v4623_v26 = vpack.c.bf16 %v877_v20, %v877_v20  ;;  %v4629_v34 = vpack.c.bf16 %v879_v22, %v879_v22  ;;  %v3778_v19 = vcombine.high %v1068_v13, %v1072_v14  ;;  %v3780_v20 = vcombine.high %v1069_v15, %v1073_v16  ;;  %v1080_v22 = vld [vmem:[#allocation10 + $0x620] sm:$0xff]  ;;  %v1117_v7 = vld [vmem:[#allocation10 + $0x748] sm:$0xff] }
 0x320   :  { %v3777_v25 = vcombine.low %v1068_v13, %v1072_v14  ;;  %v3779_v28 = vcombine.low %v1069_v15, %v1073_v16  ;;  %v1116_v5 = vld [vmem:[#allocation10 + $0x740] sm:$0xff] }
 0x321   :  { %2494 = vmatprep.mubr.bf16.mxu0 %v4623_v26  ;;  %2576 = vmatprep.mubr.bf16.mxu1 %v4623_v26  ;;  %v1120_v6 = vld [vmem:[#allocation10 + $0x760] sm:$0xff] }
 0x322   :  { %2495 = vmatmul.mubr.bf16.vlgmr.msra.gmra.mrb[8].mxu0 %v4625_v27  ;;  %2577 = vmatmul.mubr.bf16.vlgmr.msra.gmra.mrb[8].mxu1 %v4625_v27  ;;  %v3826_v13 = vcombine.high %v1116_v5, %v1120_v6  ;;  %v1124_v15 = vld [vmem:[#allocation10 + $0x780] sm:$0xff] }
 0x323   :  { %2504 = vmatpush1.bf16.msra.mxu0 %v3721_v0  ;;  %2586 = vmatpush1.bf16.msra.mxu1 %v3723_v1  ;;  %v3762_v0 = vcombine.high %v1052_v58, %v1056_v59  ;;  %v3764_v1 = vcombine.high %v1053_v60, %v1057_v61  ;;  %v1108_v59 = vld [vmem:[#allocation10 + $0x700] sm:$0xff]  ;;  %v1109_v61 = vld [vmem:[#allocation10 + $0x708] sm:$0xff] }
 0x324   :  { %2535 = vmatprep.mubr.bf16.mxu0 %v4629_v34  ;;  %2617 = vmatprep.mubr.bf16.mxu1 %v4629_v34  ;;  %v1112_v60 = vld [vmem:[#allocation10 + $0x720] sm:$0xff] }
 0x325   :  { %2505 = vmatprep.subr.bf16.mxu0 %v3730_v29  ;;  %2587 = vmatprep.subr.bf16.mxu1 %v3732_v30  ;;  %v3786_v29 = vcombine.high %v1076_v21, %v1080_v22  ;;  %v3788_v30 = vcombine.high %v1077_v23, %v1081_v24  ;;  %v1128_v16 = vld [vmem:[#allocation10 + $0x7a0] sm:$0xff] }
 0x327   :  { %2506 = vmatpush1.bf16.msra.mxu0 %v3729_v35  ;;  %2588 = vmatpush1.bf16.msra.mxu1 %v3731_v36  ;;  %v1089_v35 = vld [vmem:[#allocation10 + $0x668] sm:$0xff]  ;;  %v3785_v36 = vcombine.low %v1076_v21, %v1080_v22  ;;  %v3834_v22 = vcombine.high %v1124_v15, %v1128_v16 }
 0x328   :  { %2507 = vmatprep.subr.bf16.mxu0 %v3738_v37  ;;  %2589 = vmatprep.subr.bf16.mxu1 %v3740_v38  ;;  %v3787_v37 = vcombine.low %v1077_v23, %v1081_v24  ;;  %v3794_v38 = vcombine.high %v1084_v31, %v1088_v32  ;;  %v3796_v39 = vcombine.high %v1085_v33, %v1089_v35  ;;  %v1132_v24 = vld [vmem:[#allocation10 + $0x7c0] sm:$0xff] }
 0x32b   :  { %2508 = vmatpush1.bf16.msra.mxu0 %v3737_v43  ;;  %2590 = vmatpush1.bf16.msra.mxu1 %v3739_v44  ;;  %v1097_v43 = vld [vmem:[#allocation10 + $0x6a8] sm:$0xff]  ;;  %v3793_v44 = vcombine.low %v1084_v31, %v1088_v32 }
 0x32c   :  { %2509 = vmatprep.subr.bf16.mxu0 %v3746_v47  ;;  %2591 = vmatprep.subr.bf16.mxu1 %v3748_v49  ;;  %v3795_v47 = vcombine.low %v1085_v33, %v1089_v35  ;;  %v3802_v49 = vcombine.high %v1092_v40, %v1096_v41  ;;  %v3804_v50 = vcombine.high %v1093_v42, %v1097_v43 }
 0x32f   :  { %2510 = vmatpush1.bf16.msra.mxu0 %v3745_v54  ;;  %2592 = vmatpush1.bf16.msra.mxu1 %v3747_v55  ;;  %v1105_v54 = vld [vmem:[#allocation10 + $0x6e8] sm:$0xff]  ;;  %v3801_v55 = vcombine.low %v1092_v40, %v1096_v41 }
 0x330   :  { %2511 = vmatprep.subr.bf16.mxu0 %v3754_v56  ;;  %2593 = vmatprep.subr.bf16.mxu1 %v3756_v57  ;;  %v3803_v56 = vcombine.low %v1093_v42, %v1097_v43  ;;  %v3810_v57 = vcombine.high %v1100_v51, %v1104_v52  ;;  %v3812_v58 = vcombine.high %v1101_v53, %v1105_v54 }
 0x333   :  { %2512 = vmatpush1.bf16.msra.mxu0 %v3753_v62  ;;  %2594 = vmatpush1.bf16.msra.mxu1 %v3755_v63  ;;  %v1113_v62 = vld [vmem:[#allocation10 + $0x728] sm:$0xff]  ;;  %v3809_v63 = vcombine.low %v1100_v51, %v1104_v52 }
 0x334   :  { %2513 = vmatprep.subr.bf16.mxu0 %v3762_v0  ;;  %2595 = vmatprep.subr.bf16.mxu1 %v3764_v1  ;;  %v3811_v0 = vcombine.low %v1101_v53, %v1105_v54  ;;  %v3818_v1 = vcombine.high %v1108_v59, %v1112_v60  ;;  %v3820_v2 = vcombine.high %v1109_v61, %v1113_v62 }
 0x337   :  { %2514 = vmatpush1.bf16.msra.mxu0 %v3761_v8  ;;  %2596 = vmatpush1.bf16.msra.mxu1 %v3763_v10  ;;  %v1121_v8 = vld [vmem:[#allocation10 + $0x768] sm:$0xff]  ;;  %v3817_v10 = vcombine.low %v1108_v59, %v1112_v60 }
 0x338   :  { %2515 = vmatprep.subr.bf16.mxu0 %v3770_v11  ;;  %2597 = vmatprep.subr.bf16.mxu1 %v3772_v12  ;;  %v3819_v11 = vcombine.low %v1109_v61, %v1113_v62  ;;  %v464_v12 = vsub.s32 2, %v4595_v45  ;;  %v3828_v14 = vcombine.high %v1117_v7, %v1121_v8 }
 0x33a   :  { %v465_v21 = vrot.slane %v4611_v3, %v464_v12  ;;  %v890_v3 = vld [vmem:[#allocation10 + $0x30] sm:$0xff] }
 0x33b   :  { %2516 = vmatpush1.bf16.msra.mxu0 %v3769_v17  ;;  %2598 = vmatpush1.bf16.msra.mxu1 %v3771_v18  ;;  %v1125_v17 = vld [vmem:[#allocation10 + $0x788] sm:$0xff] }
 0x33c   :  { %2517 = vmatprep.subr.bf16.mxu0 %v3778_v19  ;;  %2599 = vmatprep.subr.bf16.mxu1 %v3780_v20  ;;  %v1129_v18 = vld [vmem:[#allocation10 + $0x7a8] sm:$0xff]  ;;  %v3825_v19 = vcombine.low %v1116_v5, %v1120_v6  ;;  %v3827_v20 = vcombine.low %v1117_v7, %v1121_v8  ;;  %v870_v32 = vadd.f32 %v4621_v9, %v465_v21  ;;  %v895_v9 = vld [vmem:[#allocation10 + $0x58] sm:$0xff] }
 0x33d   :  { %v3836_v23 = vcombine.high %v1125_v17, %v1129_v18  ;;  %v3835_v31 = vcombine.low %v1125_v17, %v1129_v18  ;;  %v926_v18 = vld [vmem:[#allocation10 + $0x150] sm:$0xff]  ;;  %v931_v21 = vld [vmem:[#allocation10 + $0x178] sm:$0xff] }
 0x33e   :  { %v878_v41 = vmax.f32 %v870_v32, 0.0 }
 0x33f   :  { %2518 = vmatpush1.bf16.msra.mxu0 %v3777_v25  ;;  %2600 = vmatpush1.bf16.msra.mxu1 %v3779_v28  ;;  %v1136_v25 = vld [vmem:[#allocation10 + $0x7e0] sm:$0xff]  ;;  %v1133_v28 = vld [vmem:[#allocation10 + $0x7c8] sm:$0xff] }
 0x340   :  { %2519 = vmatprep.subr.bf16.mxu0 %v3786_v29  ;;  %2601 = vmatprep.subr.bf16.mxu1 %v3788_v30  ;;  %v1137_v29 = vld [vmem:[#allocation10 + $0x7e8] sm:$0xff]  ;;  %v3833_v30 = vcombine.low %v1124_v15, %v1128_v16  ;;  %v3842_v33 = vcombine.high %v1132_v24, %v1136_v25  ;;  %v4640_v51 = vpack.c.bf16 %v878_v41, %v878_v41 }
 0x341   :  { %v3844_v35 = vcombine.high %v1133_v28, %v1137_v29  ;;  %v3843_v40 = vcombine.low %v1133_v28, %v1137_v29  ;;  %v934_v28 = vld [vmem:[#allocation10 + $0x190] sm:$0xff] }
 0x342   :  { %v938_v29 = vld [vmem:[#allocation10 + $0x1b0] sm:$0xff] }
 0x343   :  { %2520 = vmatpush1.bf16.msra.mxu0 %v3785_v36  ;;  %2602 = vmatpush1.bf16.msra.mxu1 %v3787_v37  ;;  %v886_v36 = vld [vmem:[#allocation10 + $0x10] sm:$0xff]  ;;  %v887_v37 = vld [vmem:[#allocation10 + $0x18] sm:$0xff] }
 0x344   :  { %2521 = vmatprep.subr.bf16.mxu0 %v3794_v38  ;;  %2603 = vmatprep.subr.bf16.mxu1 %v3796_v39  ;;  %v891_v38 = vld [vmem:[#allocation10 + $0x38] sm:$0xff]  ;;  %v3841_v39 = vcombine.low %v1132_v24, %v1136_v25  ;;  %v3598_v42 = vcombine.high %v886_v36, %v890_v3 }
 0x345   :  { %v3600_v43 = vcombine.high %v887_v37, %v891_v38  ;;  %v3599_v52 = vcombine.low %v887_v37, %v891_v38  ;;  %v946_v37 = vld [vmem:[#allocation10 + $0x1f0] sm:$0xff]  ;;  %v943_v38 = vld [vmem:[#allocation10 + $0x1d8] sm:$0xff] }
 0x347   :  { %2522 = vmatpush1.bf16.msra.mxu0 %v3793_v44  ;;  %2604 = vmatpush1.bf16.msra.mxu1 %v3795_v47  ;;  %v894_v44 = vld [vmem:[#allocation10 + $0x50] sm:$0xff] }
 0x348   :  { %2523 = vmatprep.subr.bf16.mxu0 %v3802_v49  ;;  %2605 = vmatprep.subr.bf16.mxu1 %v3804_v50  ;;  %v898_v47 = vld [vmem:[#allocation10 + $0x70] sm:$0xff]  ;;  %v899_v49 = vld [vmem:[#allocation10 + $0x78] sm:$0xff]  ;;  %v3597_v50 = vcombine.low %v886_v36, %v890_v3 }
 0x349   :  { %v3606_v53 = vcombine.high %v894_v44, %v898_v47  ;;  %v3608_v54 = vcombine.high %v895_v9, %v899_v49  ;;  %v3605_v59 = vcombine.low %v894_v44, %v898_v47  ;;  %v3607_v60 = vcombine.low %v895_v9, %v899_v49  ;;  %v942_v3 = vld [vmem:[#allocation10 + $0x1d0] sm:$0xff]  ;;  %v951_v9 = vld [vmem:[#allocation10 + $0x218] sm:$0xff] }
 0x34a   :  { %v950_v44 = vld [vmem:[#allocation10 + $0x210] sm:$0xff]  ;;  %v955_v49 = vld [vmem:[#allocation10 + $0x238] sm:$0xff] }
 0x34b   :  { %2524 = vmatpush1.bf16.msra.mxu0 %v3801_v55  ;;  %2606 = vmatpush1.bf16.msra.mxu1 %v3803_v56  ;;  %v902_v55 = vld [vmem:[#allocation10 + $0x90] sm:$0xff] }
 0x34c   :  { %2525 = vmatprep.subr.bf16.mxu0 %v3810_v57  ;;  %2607 = vmatprep.subr.bf16.mxu1 %v3812_v58  ;;  %v906_v56 = vld [vmem:[#allocation10 + $0xb0] sm:$0xff]  ;;  %v903_v57 = vld [vmem:[#allocation10 + $0x98] sm:$0xff] }
 0x34d   :  { %v907_v58 = vld [vmem:[#allocation10 + $0xb8] sm:$0xff]  ;;  %v3614_v61 = vcombine.high %v902_v55, %v906_v56  ;;  %v3613_v5 = vcombine.low %v902_v55, %v906_v56  ;;  %v954_v47 = vld [vmem:[#allocation10 + $0x230] sm:$0xff] }
 0x34e   :  { %v3616_v62 = vcombine.high %v903_v57, %v907_v58  ;;  %v3615_v6 = vcombine.low %v903_v57, %v907_v58  ;;  %v958_v55 = vld [vmem:[#allocation10 + $0x250] sm:$0xff]  ;;  %v959_v57 = vld [vmem:[#allocation10 + $0x258] sm:$0xff] }
 0x34f   :  { %2526 = vmatpush1.bf16.msra.mxu0 %v3809_v63  ;;  %2608 = vmatpush1.bf16.msra.mxu1 %v3811_v0  ;;  %v910_v63 = vld [vmem:[#allocation10 + $0xd0] sm:$0xff]  ;;  %v963_v58 = vld [vmem:[#allocation10 + $0x278] sm:$0xff] }
 0x350   :  { %2527 = vmatprep.subr.bf16.mxu0 %v3818_v1  ;;  %2609 = vmatprep.subr.bf16.mxu1 %v3820_v2  ;;  %v914_v0 = vld [vmem:[#allocation10 + $0xf0] sm:$0xff]  ;;  %v911_v1 = vld [vmem:[#allocation10 + $0xd8] sm:$0xff] }
 0x351   :  { %v915_v2 = vld [vmem:[#allocation10 + $0xf8] sm:$0xff]  ;;  %v3622_v7 = vcombine.high %v910_v63, %v914_v0  ;;  %v962_v56 = vld [vmem:[#allocation10 + $0x270] sm:$0xff] }
 0x352   :  { %v3624_v8 = vcombine.high %v911_v1, %v915_v2  ;;  %v3623_v15 = vcombine.low %v911_v1, %v915_v2  ;;  %v967_v1 = vld [vmem:[#allocation10 + $0x298] sm:$0xff] }
 0x353   :  { %2528 = vmatpush1.bf16.msra.mxu0 %v3817_v10  ;;  %2610 = vmatpush1.bf16.msra.mxu1 %v3819_v11  ;;  %v918_v10 = vld [vmem:[#allocation10 + $0x110] sm:$0xff]  ;;  %v971_v2 = vld [vmem:[#allocation10 + $0x2b8] sm:$0xff] }
 0x354   :  { %2529 = vmatprep.subr.bf16.mxu0 %v3826_v13  ;;  %2611 = vmatprep.subr.bf16.mxu1 %v3828_v14  ;;  %v922_v11 = vld [vmem:[#allocation10 + $0x130] sm:$0xff]  ;;  %v923_v13 = vld [vmem:[#allocation10 + $0x138] sm:$0xff]  ;;  %v3621_v14 = vcombine.low %v910_v63, %v914_v0 }
 0x355   :  { %v3630_v16 = vcombine.high %v918_v10, %v922_v11  ;;  %v966_v63 = vld [vmem:[#allocation10 + $0x290] sm:$0xff] }
 0x356   :  { %v970_v0 = vld [vmem:[#allocation10 + $0x2b0] sm:$0xff] }
 0x357   :  { %2530 = vmatpush1.bf16.msra.mxu0 %v3825_v19  ;;  %2612 = vmatpush1.bf16.msra.mxu1 %v3827_v20  ;;  %v930_v19 = vld [vmem:[#allocation10 + $0x170] sm:$0xff]  ;;  %v927_v20 = vld [vmem:[#allocation10 + $0x158] sm:$0xff] }
 0x358   :  { %2531 = vmatprep.subr.bf16.mxu0 %v3834_v22  ;;  %2613 = vmatprep.subr.bf16.mxu1 %v3836_v23  ;;  %v3629_v22 = vcombine.low %v918_v10, %v922_v11  ;;  %v3638_v24 = vcombine.high %v926_v18, %v930_v19  ;;  %v3640_v25 = vcombine.high %v927_v20, %v931_v21  ;;  %v974_v10 = vld [vmem:[#allocation10 + $0x2d0] sm:$0xff] }
 0x359   :  { %v3637_v32 = vcombine.low %v926_v18, %v930_v19  ;;  %v978_v11 = vld [vmem:[#allocation10 + $0x2f0] sm:$0xff] }
 0x35a   :  { %v982_v18 = vld [vmem:[#allocation10 + $0x310] sm:$0xff] }
 0x35b   :  { %2532 = vmatpush1.bf16.msra.mxu0 %v3833_v30  ;;  %2614 = vmatpush1.bf16.msra.mxu1 %v3835_v31  ;;  %v935_v30 = vld [vmem:[#allocation10 + $0x198] sm:$0xff]  ;;  %v986_v19 = vld [vmem:[#allocation10 + $0x330] sm:$0xff] }
 0x35c   :  { %2533 = vmatprep.subr.bf16.mxu0 %v3842_v33  ;;  %2615 = vmatprep.subr.bf16.mxu1 %v3844_v35  ;;  %v939_v31 = vld [vmem:[#allocation10 + $0x1b8] sm:$0xff]  ;;  %v3639_v33 = vcombine.low %v927_v20, %v931_v21  ;;  %v3646_v35 = vcombine.high %v934_v28, %v938_v29 }
 0x35d   :  { %v3648_v36 = vcombine.high %v935_v30, %v939_v31  ;;  %v3647_v41 = vcombine.low %v935_v30, %v939_v31  ;;  %v983_v20 = vld [vmem:[#allocation10 + $0x318] sm:$0xff] }
 0x35e   :  { %v987_v21 = vld [vmem:[#allocation10 + $0x338] sm:$0xff] }
 0x35f   :  { %2534 = vmatpush1.bf16.msra.mxu0 %v3841_v39  ;;  %2616 = vmatpush1.bf16.msra.mxu1 %v3843_v40  ;;  %v947_v39 = vld [vmem:[#allocation10 + $0x1f8] sm:$0xff]  ;;  %v3645_v40 = vcombine.low %v934_v28, %v938_v29  ;;  %v990_v28 = vld [vmem:[#allocation10 + $0x350] sm:$0xff] }
 0x360   :  { %2626 = vmatprep.subr.bf16.mxu0 %v3598_v42  ;;  %2708 = vmatprep.subr.bf16.mxu1 %v3600_v43  ;;  %v3654_v42 = vcombine.high %v942_v3, %v946_v37  ;;  %v3656_v43 = vcombine.high %v943_v38, %v947_v39  ;;  %v994_v29 = vld [vmem:[#allocation10 + $0x370] sm:$0xff]  ;;  %v991_v30 = vld [vmem:[#allocation10 + $0x358] sm:$0xff] }
 0x361   :  { %v995_v31 = vld [vmem:[#allocation10 + $0x378] sm:$0xff] }
 0x362   :  { %2536 = vmatmul.mubr.bf16.vlgmr.msra.gmra.mrb[8].mxu0 %v4640_v51  ;;  %2618 = vmatmul.mubr.bf16.vlgmr.msra.gmra.mrb[8].mxu1 %v4640_v51 }
 0x363   :  { %2627 = vmatpush1.bf16.msra.mxu0 %v3597_v50  ;;  %2658 = vmatprep.mubr.bf16.mxu0 %v4623_v26  ;;  %v3653_v50 = vcombine.low %v942_v3, %v946_v37  ;;  %v998_v3 = vld [vmem:[#allocation10 + $0x390] sm:$0xff] }
 0x364   :  { %2709 = vmatpush1.bf16.msra.mxu1 %v3599_v52  ;;  %2740 = vmatprep.mubr.bf16.mxu1 %v4623_v26  ;;  %v919_v26 = vld [vmem:[#allocation10 + $0x118] sm:$0xff]  ;;  %v3655_v52 = vcombine.low %v943_v38, %v947_v39  ;;  %v1002_v37 = vld [vmem:[#allocation10 + $0x3b0] sm:$0xff] }
 0x365   :  { %2628 = vmatprep.subr.bf16.mxu0 %v3606_v53  ;;  %2710 = vmatprep.subr.bf16.mxu1 %v3608_v54  ;;  %v3632_v17 = vcombine.high %v919_v26, %v923_v13  ;;  %v3631_v23 = vcombine.low %v919_v26, %v923_v13  ;;  %v3662_v53 = vcombine.high %v950_v44, %v954_v47  ;;  %v975_v26 = vld [vmem:[#allocation10 + $0x2d8] sm:$0xff] }
 0x366   :  { %v3664_v54 = vcombine.high %v951_v9, %v955_v49  ;;  %v979_v13 = vld [vmem:[#allocation10 + $0x2f8] sm:$0xff] }
 0x367   :  { %2629 = vmatpush1.bf16.msra.mxu0 %v3605_v59  ;;  %v3661_v59 = vcombine.low %v950_v44, %v954_v47  ;;  %v999_v38 = vld [vmem:[#allocation10 + $0x398] sm:$0xff]  ;;  %v1006_v44 = vld [vmem:[#allocation10 + $0x3d0] sm:$0xff] }
 0x368   :  { %2711 = vmatpush1.bf16.msra.mxu1 %v3607_v60  ;;  %2630 = vmatprep.subr.bf16.mxu0 %v3614_v61  ;;  %v3663_v60 = vcombine.low %v951_v9, %v955_v49  ;;  %v3670_v61 = vcombine.high %v958_v55, %v962_v56  ;;  %v1003_v39 = vld [vmem:[#allocation10 + $0x3b8] sm:$0xff]  ;;  %v1010_v47 = vld [vmem:[#allocation10 + $0x3f0] sm:$0xff] }
 0x369   :  { %2712 = vmatprep.subr.bf16.mxu1 %v3616_v62  ;;  %v3672_v62 = vcombine.high %v959_v57, %v963_v58  ;;  %v1007_v9 = vld [vmem:[#allocation10 + $0x3d8] sm:$0xff] }
 0x36a   :  { %v1011_v49 = vld [vmem:[#allocation10 + $0x3f8] sm:$0xff] }
 0x36b   :  { %2631 = vmatpush1.bf16.msra.mxu0 %v3613_v5  ;;  %v3669_v5 = vcombine.low %v958_v55, %v962_v56  ;;  %v1014_v55 = vld [vmem:[#allocation10 + $0x410] sm:$0xff] }
 0x36c   :  { %2713 = vmatpush1.bf16.msra.mxu1 %v3615_v6  ;;  %2632 = vmatprep.subr.bf16.mxu0 %v3622_v7  ;;  %v3671_v6 = vcombine.low %v959_v57, %v963_v58  ;;  %v3678_v7 = vcombine.high %v966_v63, %v970_v0  ;;  %v1018_v56 = vld [vmem:[#allocation10 + $0x430] sm:$0xff]  ;;  %v1015_v57 = vld [vmem:[#allocation10 + $0x418] sm:$0xff] }
 0x36d   :  { %2714 = vmatprep.subr.bf16.mxu1 %v3624_v8  ;;  %v3680_v8 = vcombine.high %v967_v1, %v971_v2  ;;  %v1019_v58 = vld [vmem:[#allocation10 + $0x438] sm:$0xff] }
 0x36f   :  { %2633 = vmatpush1.bf16.msra.mxu0 %v3621_v14  ;;  %v3677_v14 = vcombine.low %v966_v63, %v970_v0  ;;  %v1022_v63 = vld [vmem:[#allocation10 + $0x450] sm:$0xff] }
 0x370   :  { %2715 = vmatpush1.bf16.msra.mxu1 %v3623_v15  ;;  %2634 = vmatprep.subr.bf16.mxu0 %v3630_v16  ;;  %v3679_v15 = vcombine.low %v967_v1, %v971_v2  ;;  %v3686_v16 = vcombine.high %v974_v10, %v978_v11  ;;  %v1026_v0 = vld [vmem:[#allocation10 + $0x470] sm:$0xff]  ;;  %v3725_v1 = vcombine.low %v1014_v55, %v1018_v56  ;;  %v1023_v2 = vld [vmem:[#allocation10 + $0x458] sm:$0xff] }
 0x371   :  { %2716 = vmatprep.subr.bf16.mxu1 %v3632_v17  ;;  %v3688_v17 = vcombine.high %v975_v26, %v979_v13 }
 0x373   :  { %2635 = vmatpush1.bf16.msra.mxu0 %v3629_v22  ;;  %v3685_v22 = vcombine.low %v974_v10, %v978_v11  ;;  %v1034_v10 = vld [vmem:[#allocation10 + $0x4b0] sm:$0xff] }
 0x374   :  { %2717 = vmatpush1.bf16.msra.mxu1 %v3631_v23  ;;  %2636 = vmatprep.subr.bf16.mxu0 %v3638_v24  ;;  %v3687_v23 = vcombine.low %v975_v26, %v979_v13  ;;  %v3694_v24 = vcombine.high %v982_v18, %v986_v19  ;;  %v1031_v26 = vld [vmem:[#allocation10 + $0x498] sm:$0xff] }
 0x375   :  { %2718 = vmatprep.subr.bf16.mxu1 %v3640_v25  ;;  %v3696_v25 = vcombine.high %v983_v20, %v987_v21  ;;  %v1035_v13 = vld [vmem:[#allocation10 + $0x4b8] sm:$0xff] }
 0x377   :  { %2637 = vmatpush1.bf16.msra.mxu0 %v3637_v32  ;;  %v3693_v32 = vcombine.low %v982_v18, %v986_v19  ;;  %v1038_v18 = vld [vmem:[#allocation10 + $0x4d0] sm:$0xff] }
 0x378   :  { %2719 = vmatpush1.bf16.msra.mxu1 %v3639_v33  ;;  %2638 = vmatprep.subr.bf16.mxu0 %v3646_v35  ;;  %v3695_v33 = vcombine.low %v983_v20, %v987_v21  ;;  %v3702_v35 = vcombine.high %v990_v28, %v994_v29  ;;  %v1042_v19 = vld [vmem:[#allocation10 + $0x4f0] sm:$0xff]  ;;  %v1039_v20 = vld [vmem:[#allocation10 + $0x4d8] sm:$0xff] }
 0x379   :  { %2720 = vmatprep.subr.bf16.mxu1 %v3648_v36  ;;  %v3704_v36 = vcombine.high %v991_v30, %v995_v31  ;;  %v1043_v21 = vld [vmem:[#allocation10 + $0x4f8] sm:$0xff] }
 0x37b   :  { %2639 = vmatpush1.bf16.msra.mxu0 %v3645_v40  ;;  %v3701_v40 = vcombine.low %v990_v28, %v994_v29  ;;  %v1050_v28 = vld [vmem:[#allocation10 + $0x530] sm:$0xff]  ;;  %v1047_v29 = vld [vmem:[#allocation10 + $0x518] sm:$0xff] }
 0x37c   :  { %2721 = vmatpush1.bf16.msra.mxu1 %v3647_v41  ;;  %2640 = vmatprep.subr.bf16.mxu0 %v3654_v42  ;;  %v3703_v41 = vcombine.low %v991_v30, %v995_v31  ;;  %v3710_v42 = vcombine.high %v998_v3, %v1002_v37  ;;  %v1051_v30 = vld [vmem:[#allocation10 + $0x538] sm:$0xff]  ;;  %v3751_v31 = vcombine.low %v1039_v20, %v1043_v21 }
 0x37d   :  { %2722 = vmatprep.subr.bf16.mxu1 %v3656_v43  ;;  %v3712_v43 = vcombine.high %v999_v38, %v1003_v39 }
 0x37f   :  { %2641 = vmatpush1.bf16.msra.mxu0 %v3653_v50  ;;  %v3709_v50 = vcombine.low %v998_v3, %v1002_v37  ;;  %v1055_v3 = vld [vmem:[#allocation10 + $0x558] sm:$0xff] }
 0x380   :  { %2723 = vmatpush1.bf16.msra.mxu1 %v3655_v52  ;;  %2642 = vmatprep.subr.bf16.mxu0 %v3662_v53  ;;  %v3711_v52 = vcombine.low %v999_v38, %v1003_v39  ;;  %v3718_v53 = vcombine.high %v1006_v44, %v1010_v47  ;;  %v1059_v37 = vld [vmem:[#allocation10 + $0x578] sm:$0xff]  ;;  %v3759_v39 = vcombine.low %v1047_v29, %v1051_v30 }
 0x381   :  { %2724 = vmatprep.subr.bf16.mxu1 %v3664_v54  ;;  %v3720_v54 = vcombine.high %v1007_v9, %v1011_v49 }
 0x383   :  { %2643 = vmatpush1.bf16.msra.mxu0 %v3661_v59  ;;  %v3717_v59 = vcombine.low %v1006_v44, %v1010_v47  ;;  %v1063_v44 = vld [vmem:[#allocation10 + $0x598] sm:$0xff] }
 0x384   :  { %2725 = vmatpush1.bf16.msra.mxu1 %v3663_v60  ;;  %2644 = vmatprep.subr.bf16.mxu0 %v3670_v61  ;;  %v3719_v60 = vcombine.low %v1007_v9, %v1011_v49  ;;  %v3726_v61 = vcombine.high %v1014_v55, %v1018_v56  ;;  %v1067_v47 = vld [vmem:[#allocation10 + $0x5b8] sm:$0xff]  ;;  %v3767_v49 = vcombine.low %v1055_v3, %v1059_v37 }
 0x385   :  { %2726 = vmatprep.subr.bf16.mxu1 %v3672_v62  ;;  %v3728_v62 = vcombine.high %v1015_v57, %v1019_v58  ;;  %v1071_v55 = vld [vmem:[#allocation10 + $0x5d8] sm:$0xff] }
 0x386   :  { %v1075_v56 = vld [vmem:[#allocation10 + $0x5f8] sm:$0xff] }
 0x387   :  { %2645 = vmatpush1.bf16.msra.mxu0 %v3669_v5  ;;  %v1027_v5 = vld [vmem:[#allocation10 + $0x478] sm:$0xff] }
 0x388   :  { %2727 = vmatpush1.bf16.msra.mxu1 %v3671_v6  ;;  %2646 = vmatprep.subr.bf16.mxu0 %v3678_v7  ;;  %v3727_v6 = vcombine.low %v1015_v57, %v1019_v58  ;;  %v3734_v7 = vcombine.high %v1022_v63, %v1026_v0  ;;  %v3736_v11 = vcombine.high %v1023_v2, %v1027_v5 }
 0x389   :  { %2728 = vmatprep.subr.bf16.mxu1 %v3680_v8  ;;  %v1030_v8 = vld [vmem:[#allocation10 + $0x490] sm:$0xff]  ;;  %v3775_v58 = vcombine.low %v1063_v44, %v1067_v47 }
 0x38b   :  { %2647 = vmatpush1.bf16.msra.mxu0 %v3677_v14  ;;  %v3733_v14 = vcombine.low %v1022_v63, %v1026_v0  ;;  %v1079_v63 = vld [vmem:[#allocation10 + $0x618] sm:$0xff] }
 0x38c   :  { %2729 = vmatpush1.bf16.msra.mxu1 %v3679_v15  ;;  %2648 = vmatprep.subr.bf16.mxu0 %v3686_v16  ;;  %v3735_v15 = vcombine.low %v1023_v2, %v1027_v5  ;;  %v3742_v16 = vcombine.high %v1030_v8, %v1034_v10  ;;  %v1083_v0 = vld [vmem:[#allocation10 + $0x638] sm:$0xff]  ;;  %v3783_v2 = vcombine.low %v1071_v55, %v1075_v56 }
 0x38d   :  { %2730 = vmatprep.subr.bf16.mxu1 %v3688_v17  ;;  %v3744_v17 = vcombine.high %v1031_v26, %v1035_v13 }
 0x38f   :  { %2649 = vmatpush1.bf16.msra.mxu0 %v3685_v22  ;;  %v3741_v22 = vcombine.low %v1030_v8, %v1034_v10  ;;  %v1090_v8 = vld [vmem:[#allocation10 + $0x670] sm:$0xff]  ;;  %v1087_v10 = vld [vmem:[#allocation10 + $0x658] sm:$0xff] }
 0x390   :  { %2731 = vmatpush1.bf16.msra.mxu1 %v3687_v23  ;;  %2650 = vmatprep.subr.bf16.mxu0 %v3694_v24  ;;  %v3750_v23 = vcombine.high %v1038_v18, %v1042_v19  ;;  %v3752_v24 = vcombine.high %v1039_v20, %v1043_v21 }
 0x391   :  { %2732 = vmatprep.subr.bf16.mxu1 %v3696_v25  ;;  %v1046_v25 = vld [vmem:[#allocation10 + $0x510] sm:$0xff] }
 0x392   :  { %v3757_v38 = vcombine.low %v1046_v25, %v1050_v28 }
 0x393   :  { %2651 = vmatpush1.bf16.msra.mxu0 %v3693_v32  ;;  %v3758_v32 = vcombine.high %v1046_v25, %v1050_v28  ;;  %v1103_v25 = vld [vmem:[#allocation10 + $0x6d8] sm:$0xff] }
 0x394   :  { %2733 = vmatpush1.bf16.msra.mxu1 %v3695_v33  ;;  %2652 = vmatprep.subr.bf16.mxu0 %v3702_v35  ;;  %v3760_v33 = vcombine.high %v1047_v29, %v1051_v30  ;;  %v1054_v35 = vld [vmem:[#allocation10 + $0x550] sm:$0xff]  ;;  %v1107_v28 = vld [vmem:[#allocation10 + $0x6f8] sm:$0xff] }
 0x395   :  { %2734 = vmatprep.subr.bf16.mxu1 %v3704_v36  ;;  %v1058_v36 = vld [vmem:[#allocation10 + $0x570] sm:$0xff] }
 0x396   :  { %v3765_v9 = vcombine.low %v1054_v35, %v1058_v36 }
 0x397   :  { %2653 = vmatpush1.bf16.msra.mxu0 %v3701_v40  ;;  %v3766_v40 = vcombine.high %v1054_v35, %v1058_v36  ;;  %v1111_v35 = vld [vmem:[#allocation10 + $0x718] sm:$0xff] }
 0x398   :  { %2735 = vmatpush1.bf16.msra.mxu1 %v3703_v41  ;;  %2654 = vmatprep.subr.bf16.mxu0 %v3710_v42  ;;  %v3768_v41 = vcombine.high %v1055_v3, %v1059_v37  ;;  %v1062_v42 = vld [vmem:[#allocation10 + $0x590] sm:$0xff]  ;;  %v1115_v36 = vld [vmem:[#allocation10 + $0x738] sm:$0xff]  ;;  %v3815_v37 = vcombine.low %v1103_v25, %v1107_v28 }
 0x399   :  { %2736 = vmatprep.subr.bf16.mxu1 %v3712_v43  ;;  %v1066_v43 = vld [vmem:[#allocation10 + $0x5b0] sm:$0xff] }
 0x39a   :  { %v3773_v57 = vcombine.low %v1062_v42, %v1066_v43 }
 0x39b   :  { %2655 = vmatpush1.bf16.msra.mxu0 %v3709_v50  ;;  %v3774_v50 = vcombine.high %v1062_v42, %v1066_v43  ;;  %v1119_v42 = vld [vmem:[#allocation10 + $0x758] sm:$0xff] }
 0x39c   :  { %2737 = vmatpush1.bf16.msra.mxu1 %v3711_v52  ;;  %2656 = vmatprep.subr.bf16.mxu0 %v3718_v53  ;;  %v3776_v52 = vcombine.high %v1063_v44, %v1067_v47  ;;  %v1070_v53 = vld [vmem:[#allocation10 + $0x5d0] sm:$0xff]  ;;  %v1123_v43 = vld [vmem:[#allocation10 + $0x778] sm:$0xff]  ;;  %v3823_v47 = vcombine.low %v1111_v35, %v1115_v36 }
 0x39d   :  { %2738 = vmatprep.subr.bf16.mxu1 %v3720_v54  ;;  %v1074_v54 = vld [vmem:[#allocation10 + $0x5f0] sm:$0xff] }
 0x39f   :  { %2657 = vmatpush1.bf16.msra.mxu0 %v3717_v59  ;;  %v3782_v59 = vcombine.high %v1070_v53, %v1074_v54 }
 0x3a0   :  { %2739 = vmatpush1.bf16.msra.mxu1 %v3719_v60  ;;  %2667 = vmatprep.subr.bf16.mxu0 %v3726_v61  ;;  %v3784_v60 = vcombine.high %v1071_v55, %v1075_v56  ;;  %v1078_v61 = vld [vmem:[#allocation10 + $0x610] sm:$0xff]  ;;  %v3831_v56 = vcombine.low %v1119_v42, %v1123_v43 }
 0x3a1   :  { %2749 = vmatprep.subr.bf16.mxu1 %v3728_v62  ;;  %v1082_v62 = vld [vmem:[#allocation10 + $0x630] sm:$0xff] }
 0x3a2   :  { %2659 = vmatmul.mubr.bf16.vlgmr.msra.gmra.mrb[12].mxu0 %v4625_v27  ;;  %v3790_v5 = vcombine.high %v1078_v61, %v1082_v62 }
 0x3a3   :  { %2741 = vmatmul.mubr.bf16.vlgmr.msra.gmra.mrb[12].mxu1 %v4625_v27  ;;  %2668 = vmatpush1.bf16.msra.mxu0 %v3725_v1  ;;  %v3743_v27 = vcombine.low %v1031_v26, %v1035_v13  ;;  %v3781_v1 = vcombine.low %v1070_v53, %v1074_v54  ;;  %v3789_v26 = vcombine.low %v1078_v61, %v1082_v62  ;;  %v1127_v53 = vld [vmem:[#allocation10 + $0x798] sm:$0xff] }
 0x3a4   :  { %2699 = vmatprep.mubr.bf16.mxu0 %v4629_v34  ;;  %2750 = vmatpush1.bf16.msra.mxu1 %v3727_v6  ;;  %v3792_v6 = vcombine.high %v1079_v63, %v1083_v0  ;;  %v3791_v13 = vcombine.low %v1079_v63, %v1083_v0  ;;  %v1131_v54 = vld [vmem:[#allocation10 + $0x7b8] sm:$0xff] }
 0x3a5   :  { %2781 = vmatprep.mubr.bf16.mxu1 %v4629_v34  ;;  %2669 = vmatprep.subr.bf16.mxu0 %v3734_v7  ;;  %v3749_v34 = vcombine.low %v1038_v18, %v1042_v19  ;;  %v1086_v7 = vld [vmem:[#allocation10 + $0x650] sm:$0xff]  ;;  %v1095_v18 = vld [vmem:[#allocation10 + $0x698] sm:$0xff]  ;;  %v3839_v0 = vcombine.low %v1127_v53, %v1131_v54 }
 0x3a6   :  { %2751 = vmatprep.subr.bf16.mxu1 %v3736_v11  ;;  %v1091_v11 = vld [vmem:[#allocation10 + $0x678] sm:$0xff]  ;;  %v3797_v20 = vcombine.low %v1086_v7, %v1090_v8 }
 0x3a7   :  { %2670 = vmatpush1.bf16.msra.mxu0 %v3733_v14  ;;  %v3798_v14 = vcombine.high %v1086_v7, %v1090_v8  ;;  %v1099_v19 = vld [vmem:[#allocation10 + $0x6b8] sm:$0xff]  ;;  %v3799_v21 = vcombine.low %v1087_v10, %v1091_v11  ;;  %v4201_v7 = vld [vmem:[#allocation11 + $0x40] sm:$0xff]  }
 0x3a8   :  { %2752 = vmatpush1.bf16.msra.mxu1 %v3735_v15  ;;  %2671 = vmatprep.subr.bf16.mxu0 %v3742_v16  ;;  %v3800_v15 = vcombine.high %v1087_v10, %v1091_v11  ;;  %v1094_v16 = vld [vmem:[#allocation10 + $0x690] sm:$0xff]  ;;  %v3807_v30 = vcombine.low %v1095_v18, %v1099_v19  ;;  %v1135_v61 = vld [vmem:[#allocation10 + $0x7d8] sm:$0xff]  ;;  %v4202_v8 = vld [vmem:[#allocation11 + $0xc0] sm:$0xff]  }
 0x3a9   :  { %2753 = vmatprep.subr.bf16.mxu1 %v3744_v17  ;;  %v1098_v17 = vld [vmem:[#allocation10 + $0x6b0] sm:$0xff]  ;;  %v1139_v62 = vld [vmem:[#allocation10 + $0x7f8] sm:$0xff]  ;;  %v4203_v10 = vld [vmem:[#allocation11] sm:$0xff]  }
 0x3aa   :  { %v3805_v29 = vcombine.low %v1094_v16, %v1098_v17  ;;  %v4204_v11 = vld [vmem:[#allocation11 + $0x80] sm:$0xff]  }
 0x3ab   :  { %2672 = vmatpush1.bf16.msra.mxu0 %v3741_v22  ;;  %v3806_v22 = vcombine.high %v1094_v16, %v1098_v17  ;;  %v4209_v16 = vld [vmem:[#allocation11 + $0x50] sm:$0xff]  }
 0x3ac   :  { %2754 = vmatpush1.bf16.msra.mxu1 %v3743_v27  ;;  %2673 = vmatprep.subr.bf16.mxu0 %v3750_v23  ;;  %v3808_v27 = vcombine.high %v1095_v18, %v1099_v19  ;;  %v1102_v23 = vld [vmem:[#allocation10 + $0x6d0] sm:$0xff] }
 0x3ad   :  { %2755 = vmatprep.subr.bf16.mxu1 %v3752_v24  ;;  %v1106_v24 = vld [vmem:[#allocation10 + $0x6f0] sm:$0xff] }
 0x3ae   :  { %v3813_v3 = vcombine.low %v1102_v23, %v1106_v24  ;;  %v4210_v17 = vld [vmem:[#allocation11 + $0xd0] sm:$0xff]  }
 0x3af   :  { %2674 = vmatpush1.bf16.msra.mxu0 %v3749_v34  ;;  %v3814_v34 = vcombine.high %v1102_v23, %v1106_v24  ;;  %v4211_v18 = vld [vmem:[#allocation11 + $0x10] sm:$0xff]   ;;  %v4218_v23 = vld [vmem:[#allocation11 + $0xe0] sm:$0xff]  }
 0x3b0   :  { %2756 = vmatpush1.bf16.msra.mxu1 %v3751_v31  ;;  %2675 = vmatprep.subr.bf16.mxu0 %v3758_v32  ;;  %v3816_v31 = vcombine.high %v1103_v25, %v1107_v28  ;;  %v1110_v32 = vld [vmem:[#allocation10 + $0x710] sm:$0xff]  ;;  %v4219_v24 = vld [vmem:[#allocation11 + $0x20] sm:$0xff]   ;;  %v4221_v28 = vld [vmem:[#allocation11 + $0x68] sm:$0xff]  }
 0x3b1   :  { %2757 = vmatprep.subr.bf16.mxu1 %v3760_v33  ;;  %v1114_v33 = vld [vmem:[#allocation10 + $0x730] sm:$0xff]  ;;  %v4220_v25 = vld [vmem:[#allocation11 + $0xa0] sm:$0xff]  }
 0x3b2   :  { %v3821_v44 = vcombine.low %v1110_v32, %v1114_v33  ;;  %v4212_v19 = vld [vmem:[#allocation11 + $0x90] sm:$0xff]  }
 0x3b3   :  { %2676 = vmatpush1.bf16.msra.mxu0 %v3757_v38  ;;  %v3822_v38 = vcombine.high %v1110_v32, %v1114_v33  ;;  %v4226_v32 = vld [vmem:[#allocation11 + $0xf0] sm:$0xff]  }
 0x3b4   :  { %2758 = vmatpush1.bf16.msra.mxu1 %v3759_v39  ;;  %2677 = vmatprep.subr.bf16.mxu0 %v3766_v40  ;;  %v3824_v39 = vcombine.high %v1111_v35, %v1115_v36  ;;  %v1118_v40 = vld [vmem:[#allocation10 + $0x750] sm:$0xff]  ;;  %v4229_v36 = vld [vmem:[#allocation11 + $0x78] sm:$0xff]  }
 0x3b5   :  { %2759 = vmatprep.subr.bf16.mxu1 %v3768_v41  ;;  %v1122_v41 = vld [vmem:[#allocation10 + $0x770] sm:$0xff] }
 0x3b6   :  { %v3829_v55 = vcombine.low %v1118_v40, %v1122_v41  ;;  %v4227_v33 = vld [vmem:[#allocation11 + $0x30] sm:$0xff]  }
 0x3b7   :  { %2678 = vmatpush1.bf16.msra.mxu0 %v3765_v9  ;;  %v3830_v9 = vcombine.high %v1118_v40, %v1122_v41  ;;  %v4228_v35 = vld [vmem:[#allocation11 + $0xb0] sm:$0xff]   ;;  %v4234_v40 = vld [vmem:[#allocation11 + $0x1c0] sm:$0xff]   ;;  %v4655_v41 = vld [vmem:[%s4698_s8] sm:$0xff] }
 0x3b8   :  { %2760 = vmatpush1.bf16.msra.mxu1 %v3767_v49  ;;  %2679 = vmatprep.subr.bf16.mxu0 %v3774_v50  ;;  %v3832_v49 = vcombine.high %v1119_v42, %v1123_v43  ;;  %v1126_v50 = vld [vmem:[#allocation10 + $0x790] sm:$0xff]  ;;  %v1145_v42 = vrot.slane %v4655_v41, %v4598_v46  ;;  %v1153_v43 = vrot.slane %v4655_v41, %v464_v12 }
 0x3b9   :  { %2761 = vmatprep.subr.bf16.mxu1 %v3776_v52  ;;  %v1130_v52 = vld [vmem:[#allocation10 + $0x7b0] sm:$0xff] }
 0x3ba   :  { %v3837_v63 = vcombine.low %v1126_v50, %v1130_v52 }
 0x3bb   :  { %2680 = vmatpush1.bf16.msra.mxu0 %v3773_v57  ;;  %v3838_v57 = vcombine.high %v1126_v50, %v1130_v52 }
 0x3bc   :  { %2762 = vmatpush1.bf16.msra.mxu1 %v3775_v58  ;;  %2681 = vmatprep.subr.bf16.mxu0 %v3782_v59  ;;  %v3840_v58 = vcombine.high %v1127_v53, %v1131_v54  ;;  %v1134_v59 = vld [vmem:[#allocation10 + $0x7d0] sm:$0xff] }
 0x3bd   :  { %2763 = vmatprep.subr.bf16.mxu1 %v3784_v60  ;;  %v1138_v60 = vld [vmem:[#allocation10 + $0x7f0] sm:$0xff] }
 0x3bf   :  { %2682 = vmatpush1.bf16.msra.mxu0 %v3781_v1  ;;  %v3846_v1 = vcombine.high %v1134_v59, %v1138_v60 }
 0x3c0   :  { %2764 = vmatpush1.bf16.msra.mxu1 %v3783_v2  ;;  %2683 = vmatprep.subr.bf16.mxu0 %v3790_v5  ;;  %v3848_v2 = vcombine.high %v1135_v61, %v1139_v62  ;;  %v3845_v5 = vcombine.low %v1134_v59, %v1138_v60 }
 0x3c1   :  { %2765 = vmatprep.subr.bf16.mxu1 %v3792_v6  ;;  %v3847_v6 = vcombine.low %v1135_v61, %v1139_v62 }
 0x3c3   :  { %2684 = vmatpush1.bf16.msra.mxu0 %v3789_v26  ;;  %v4205_v26 = vld [vmem:[#allocation11 + $0x48] sm:$0xff]  }
 0x3c4   :  { %2766 = vmatpush1.bf16.msra.mxu1 %v3791_v13  ;;  %2685 = vmatprep.subr.bf16.mxu0 %v3798_v14  ;;  %v4206_v13 = vld [vmem:[#allocation11 + $0xc8] sm:$0xff]  }
 0x3c5   :  { %2767 = vmatprep.subr.bf16.mxu1 %v3800_v15  ;;  %v4207_v14 = vld [vmem:[#allocation11 + $0x8] sm:$0xff]  }
 0x3c6   :  { %v4208_v15 = vld [vmem:[#allocation11 + $0x88] sm:$0xff]  }
 0x3c7   :  { %2686 = vmatpush1.bf16.msra.mxu0 %v3797_v20  ;;  %v4213_v20 = vld [vmem:[#allocation11 + $0x58] sm:$0xff]  }
 0x3c8   :  { %2768 = vmatpush1.bf16.msra.mxu1 %v3799_v21  ;;  %2687 = vmatprep.subr.bf16.mxu0 %v3806_v22  ;;  %v4214_v21 = vld [vmem:[#allocation11 + $0xd8] sm:$0xff]  }
 0x3c9   :  { %2769 = vmatprep.subr.bf16.mxu1 %v3808_v27  ;;  %v4215_v22 = vld [vmem:[#allocation11 + $0x18] sm:$0xff]   ;;  %v4217_v27 = vld [vmem:[#allocation11 + $0x60] sm:$0xff]  }
 0x3cb   :  { %2688 = vmatpush1.bf16.msra.mxu0 %v3805_v29  ;;  %v4222_v29 = vld [vmem:[#allocation11 + $0xe8] sm:$0xff]  }
 0x3cc   :  { %2770 = vmatpush1.bf16.msra.mxu1 %v3807_v30  ;;  %2689 = vmatprep.subr.bf16.mxu0 %v3814_v34  ;;  %v4223_v30 = vld [vmem:[#allocation11 + $0x28] sm:$0xff]  }
 0x3cd   :  { %2771 = vmatprep.subr.bf16.mxu1 %v3816_v31  ;;  %v4224_v34 = vld [vmem:[#allocation11 + $0xa8] sm:$0xff]   ;;  %v4225_v31 = vld [vmem:[#allocation11 + $0x70] sm:$0xff]  }
 0x3cf   :  { %2690 = vmatpush1.bf16.msra.mxu0 %v3813_v3  ;;  %v4230_v3 = vld [vmem:[#allocation11 + $0xf8] sm:$0xff]  }
 0x3d0   :  { %2772 = vmatpush1.bf16.msra.mxu1 %v3815_v37  ;;  %2691 = vmatprep.subr.bf16.mxu0 %v3822_v38  ;;  %v4231_v37 = vld [vmem:[#allocation11 + $0x38] sm:$0xff]  }
 0x3d1   :  { %2773 = vmatprep.subr.bf16.mxu1 %v3824_v39  ;;  %v4232_v38 = vld [vmem:[#allocation11 + $0xb8] sm:$0xff]   ;;  %v4233_v39 = vld [vmem:[#allocation11 + $0x140] sm:$0xff]  }
 0x3d3   :  { %2692 = vmatpush1.bf16.msra.mxu0 %v3821_v44  ;;  %v1149_v44 = vrot.slane %v4655_v41, %v4604_v48 }
 0x3d4   :  { %2774 = vmatpush1.bf16.msra.mxu1 %v3823_v47  ;;  %2693 = vmatprep.subr.bf16.mxu0 %v3830_v9  ;;  %v1157_v47 = vrot.slane %v4655_v41, %v468_v4  ;;  %v4236_v4 = vld [vmem:[#allocation11 + $0x180] sm:$0xff]  }
 0x3d5   :  { %2775 = vmatprep.subr.bf16.mxu1 %v3832_v49 }
 0x3d7   :  { %2694 = vmatpush1.bf16.msra.mxu0 %v3829_v55 }
 0x3d8   :  { %2776 = vmatpush1.bf16.msra.mxu1 %v3831_v56  ;;  %2695 = vmatprep.subr.bf16.mxu0 %v3838_v57 }
 0x3d9   :  { %2777 = vmatprep.subr.bf16.mxu1 %v3840_v58 }
 0x3db   :  { %2696 = vmatpush1.bf16.msra.mxu0 %v3837_v63 }
 0x3dc   :  { %2778 = vmatpush1.bf16.msra.mxu1 %v3839_v0  ;;  %2697 = vmatprep.subr.bf16.mxu0 %v3846_v1  ;;  %v4235_v0 = vld [vmem:[#allocation11 + $0x100] sm:$0xff]  }
 0x3dd   :  { %2779 = vmatprep.subr.bf16.mxu1 %v3848_v2 }
 0x3df   :  { %2698 = vmatpush1.bf16.msra.mxu0 %v3845_v5  ;;  %v4237_v5 = vld [vmem:[#allocation11 + $0x148] sm:$0xff]  }
 0x3e0   :  { %2780 = vmatpush1.bf16.msra.mxu1 %v3847_v6  ;;  %3923 = vmatprep.subr.bf16.mxu0 %v4201_v7  ;;  %v4238_v6 = vld [vmem:[#allocation11 + $0x1c8] sm:$0xff]  }
 0x3e1   :  { %3945 = vmatprep.subr.bf16.mxu1 %v4202_v8  ;;  %v4239_v7 = vld [vmem:[#allocation11 + $0x108] sm:$0xff]  }
 0x3e2   :  { %2700 = vmatmul.mubr.bf16.vlgmr.msra.gmra.mrb[12].mxu0 %v4640_v51  ;;  %v4240_v8 = vld [vmem:[#allocation11 + $0x188] sm:$0xff]  }
 0x3e3   :  { %2782 = vmatmul.mubr.bf16.vlgmr.msra.gmra.mrb[12].mxu1 %v4640_v51  ;;  %3924 = vmatpush3.bf16.msra.mxu0 %v4203_v10  ;;  %v4216_v51 = vld [vmem:[#allocation11 + $0x98] sm:$0xff]   ;;  %v4241_v10 = vld [vmem:[#allocation11 + $0x150] sm:$0xff]  }
 0x3e4   :  { %3946 = vmatpush3.bf16.msra.mxu1 %v4204_v11  ;;  %3925 = vmatprep.subr.bf16.mxu0 %v4205_v26  ;;  %v4242_v11 = vld [vmem:[#allocation11 + $0x1d0] sm:$0xff]  }
 0x3e5   :  { %3947 = vmatprep.subr.bf16.mxu1 %v4206_v13  ;;  %v4243_v26 = vld [vmem:[#allocation11 + $0x110] sm:$0xff]  }
 0x3e6   :  { %v4244_v13 = vld [vmem:[#allocation11 + $0x190] sm:$0xff]  }
 0x3e7   :  { %3926 = vmatpush3.bf16.msra.mxu0 %v4207_v14  ;;  %v4245_v14 = vld [vmem:[#allocation11 + $0x158] sm:$0xff]  }
 0x3e8   :  { %3948 = vmatpush3.bf16.msra.mxu1 %v4208_v15  ;;  %3927 = vmatprep.subr.bf16.mxu0 %v4209_v16  ;;  %v4246_v15 = vld [vmem:[#allocation11 + $0x1d8] sm:$0xff]  }
 0x3e9   :  { %3949 = vmatprep.subr.bf16.mxu1 %v4210_v17  ;;  %v4247_v16 = vld [vmem:[#allocation11 + $0x118] sm:$0xff]  }
 0x3ea   :  { %v4248_v17 = vld [vmem:[#allocation11 + $0x198] sm:$0xff]  }
 0x3eb   :  { %3928 = vmatpush3.bf16.msra.mxu0 %v4211_v18  ;;  %v4249_v18 = vld [vmem:[#allocation11 + $0x160] sm:$0xff]  }
 0x3ec   :  { %3950 = vmatpush3.bf16.msra.mxu1 %v4212_v19  ;;  %3929 = vmatprep.subr.bf16.mxu0 %v4213_v20  ;;  %v4250_v19 = vld [vmem:[#allocation11 + $0x1e0] sm:$0xff]  }
 0x3ed   :  { %3951 = vmatprep.subr.bf16.mxu1 %v4214_v21  ;;  %v4251_v20 = vld [vmem:[#allocation11 + $0x120] sm:$0xff]  }
 0x3ee   :  { %v4252_v21 = vld [vmem:[#allocation11 + $0x1a0] sm:$0xff]  }
 0x3ef   :  { %3930 = vmatpush3.bf16.msra.mxu0 %v4215_v22  ;;  %v4253_v22 = vld [vmem:[#allocation11 + $0x168] sm:$0xff]  }
 0x3f0   :  { %3952 = vmatpush3.bf16.msra.mxu1 %v4216_v51  ;;  %3931 = vmatprep.subr.bf16.mxu0 %v4217_v27  ;;  %v4254_v51 = vld [vmem:[#allocation11 + $0x1e8] sm:$0xff]  }
 0x3f1   :  { %3953 = vmatprep.subr.bf16.mxu1 %v4218_v23  ;;  %v4255_v27 = vld [vmem:[#allocation11 + $0x128] sm:$0xff]  }
 0x3f2   :  { %v4256_v23 = vld [vmem:[#allocation11 + $0x1a8] sm:$0xff]  }
 0x3f3   :  { %3932 = vmatpush3.bf16.msra.mxu0 %v4219_v24  ;;  %v4257_v24 = vld [vmem:[#allocation11 + $0x170] sm:$0xff]  }
 0x3f4   :  { %3954 = vmatpush3.bf16.msra.mxu1 %v4220_v25  ;;  %3933 = vmatprep.subr.bf16.mxu0 %v4221_v28  ;;  %v4258_v25 = vld [vmem:[#allocation11 + $0x1f0] sm:$0xff]  }
 0x3f5   :  { %3955 = vmatprep.subr.bf16.mxu1 %v4222_v29  ;;  %v4259_v28 = vld [vmem:[#allocation11 + $0x130] sm:$0xff]  }
 0x3f6   :  { %v4260_v29 = vld [vmem:[#allocation11 + $0x1b0] sm:$0xff]  }
 0x3f7   :  { %3934 = vmatpush3.bf16.msra.mxu0 %v4223_v30  ;;  %v4261_v30 = vld [vmem:[#allocation11 + $0x178] sm:$0xff]  }
 0x3f8   :  { %3956 = vmatpush3.bf16.msra.mxu1 %v4224_v34  ;;  %3935 = vmatprep.subr.bf16.mxu0 %v4225_v31  ;;  %v4262_v34 = vld [vmem:[#allocation11 + $0x1f8] sm:$0xff]  }
 0x3f9   :  { %3957 = vmatprep.subr.bf16.mxu1 %v4226_v32  ;;  %v4263_v31 = vld [vmem:[#allocation11 + $0x138] sm:$0xff]  }
 0x3fa   :  { %v4264_v32 = vld [vmem:[#allocation11 + $0x1b8] sm:$0xff]  }
 0x3fb   :  { %3936 = vmatpush3.bf16.msra.mxu0 %v4227_v33  ;;  %v1160_v33 = vsub.s32 4, %v4595_v45 }
 0x3fc   :  { %3958 = vmatpush3.bf16.msra.mxu1 %v4228_v35  ;;  %3937 = vmatprep.subr.bf16.mxu0 %v4229_v36  ;;  %v1168_v35 = vsub.s32 6, %v4595_v45  ;;  %v1164_v36 = vsub.s32 5, %v4595_v45 }
 0x3fd   :  { %3959 = vmatprep.subr.bf16.mxu1 %v4230_v3  ;;  %v1172_v3 = vsub.s32 7, %v4595_v45 }
 0x3ff   :  { %3938 = vmatpush3.bf16.msra.mxu0 %v4231_v37  ;;  %v1161_v37 = vrot.slane %v4655_v41, %v1160_v33 }
 0x400   :  { %3960 = vmatpush3.bf16.msra.mxu1 %v4232_v38  ;;  %3967 = vmatprep.subr.bf16.mxu0 %v4233_v39  ;;  %v1169_v38 = vrot.slane %v4655_v41, %v1168_v35  ;;  %v1165_v39 = vrot.slane %v4655_v41, %v1164_v36 }
 0x401   :  { %3989 = vmatprep.subr.bf16.mxu1 %v4234_v40  ;;  %v1173_v40 = vrot.slane %v4655_v41, %v1172_v3 }
 0x435   :  { %v2537_v9 = vpop.f32.mrb[8].mxu0  ;;  %v2619_v49 = vpop.f32.mrb[8].mxu1 }
 0x436   :  { %v4031_v50 = vadd.f32 %v2537_v9, %v1145_v42  ;;  %v4033_v52 = vadd.f32 %v2619_v49, %v1153_v43  ;;  %v2539_v53 = vpop.f32.mrb[9].mxu0  ;;  %v2621_v54 = vpop.f32.mrb[9].mxu1 }
 0x437   :  { %v4032_v55 = vadd.f32 %v2539_v53, %v1149_v44  ;;  %v4034_v56 = vadd.f32 %v2621_v54, %v1157_v47  ;;  %v2541_v46 = vpop.f32.mrb[10].mxu0  ;;  %v2623_v57 = vpop.f32.mrb[10].mxu1 }
 0x438   :  { %v2790_v58 = vmax.f32 %v4031_v50, 0.0  ;;  %v2792_v59 = vmax.f32 %v4033_v52, 0.0  ;;  %v2542_v12 = vpop.f32.mrb[11].mxu0  ;;  %v2624_v60 = vpop.f32.mrb[11].mxu1 }
 0x439   :  { %v2791_v61 = vmax.f32 %v4032_v55, 0.0  ;;  %v2793_v48 = vmax.f32 %v4034_v56, 0.0 }
 0x43a   :  { %v2798_v1 = vpack.c.bf16 %v2790_v58, %v2790_v58  ;;  %v2800_v2 = vpack.c.bf16 %v2792_v59, %v2792_v59 }
 0x43b   :  { %v2799_v62 = vpack.c.bf16 %v2791_v61, %v2791_v61  ;;  %v2801_v63 = vpack.c.bf16 %v2793_v48, %v2793_v48 }
 0x43d   :  { %3357 = vmatprep.mubr.bf16.mxu0 %v2799_v62  ;;  %3397 = vmatprep.mubr.bf16.mxu1 %v2801_v63  ;;  %v3849_v62 = vld [vmem:[%s4700_s10] ss:$0 sm:$0xff]  ;;  %s4446_s10 = smov [#allocation13]  }
 0x43e   :  { %3358 = vmatmul.mubr.bf16.vlgmr.msra.gmra.mrb[16].mxu0 %v2798_v1  ;;  %3398 = vmatmul.mubr.bf16.vlgmr.msra.gmra.mrb[16].mxu1 %v2800_v2  ;;  %s3492_s22 = sshll.u32 %s4446_s10, 4  ;;  %s3493_s22 = int_to_ptr.vmem [resolvable:$true] %s3492_s22 }
 0x43f   :  { %3968 = vmatpush3.bf16.msra.mxu0 %v4235_v0  ;;  %3990 = vmatpush3.bf16.msra.mxu1 %v4236_v4  ;;  %s4397_s1 = scalar_lea.vmem %s3493_s22, 128  ;;  %p4402_p7 = scmp.lt.s32.totalorder %s3493_s22, %s3493_s22 }
 0x440   :  { %3969 = vmatprep.subr.bf16.mxu0 %v4237_v5  ;;  %3991 = vmatprep.subr.bf16.mxu1 %v4238_v6  ;;  %p4398_p6 = scmp.ne.s32.totalorder %s3493_s22, %s4397_s1  ;;  %p4403_p8 = scmp.lt.s32.totalorder %s4397_s1, %s4397_s1 }
 0x442   :  { %p4404_p9 = por %p4403_p8, %p4402_p7 }
 0x443   :  { %3970 = vmatpush3.bf16.msra.mxu0 %v4239_v7  ;;  %3992 = vmatpush3.bf16.msra.mxu1 %v4240_v8 }
 0x444   :  { %3971 = vmatprep.subr.bf16.mxu0 %v4241_v10  ;;  %3993 = vmatprep.subr.bf16.mxu1 %v4242_v11  ;;  %p4405_p10 = pnand %p4404_p9, %p4398_p6 }
 0x447   :  { %3972 = vmatpush3.bf16.msra.mxu0 %v4243_v26  ;;  %3994 = vmatpush3.bf16.msra.mxu1 %v4244_v13 }
 0x448   :  { %3973 = vmatprep.subr.bf16.mxu0 %v4245_v14  ;;  %3995 = vmatprep.subr.bf16.mxu1 %v4246_v15 }
 0x44b   :  { %3974 = vmatpush3.bf16.msra.mxu0 %v4247_v16  ;;  %3996 = vmatpush3.bf16.msra.mxu1 %v4248_v17 }
 0x44c   :  { %3975 = vmatprep.subr.bf16.mxu0 %v4249_v18  ;;  %3997 = vmatprep.subr.bf16.mxu1 %v4250_v19 }
 0x44f   :  { %3976 = vmatpush3.bf16.msra.mxu0 %v4251_v20  ;;  %3998 = vmatpush3.bf16.msra.mxu1 %v4252_v21 }
 0x450   :  { %3977 = vmatprep.subr.bf16.mxu0 %v4253_v22  ;;  %3999 = vmatprep.subr.bf16.mxu1 %v4254_v51 }
 0x453   :  { %3978 = vmatpush3.bf16.msra.mxu0 %v4255_v27  ;;  %4000 = vmatpush3.bf16.msra.mxu1 %v4256_v23 }
 0x454   :  { %3979 = vmatprep.subr.bf16.mxu0 %v4257_v24  ;;  %4001 = vmatprep.subr.bf16.mxu1 %v4258_v25 }
 0x457   :  { %3980 = vmatpush3.bf16.msra.mxu0 %v4259_v28  ;;  %4002 = vmatpush3.bf16.msra.mxu1 %v4260_v29 }
 0x458   :  { %3981 = vmatprep.subr.bf16.mxu0 %v4261_v30  ;;  %4003 = vmatprep.subr.bf16.mxu1 %v4262_v34 }
 0x45b   :  { %3982 = vmatpush3.bf16.msra.mxu0 %v4263_v31  ;;  %4004 = vmatpush3.bf16.msra.mxu1 %v4264_v32 }
 0x4b5   :  { %v2701_v42 = vpop.f32.mrb[12].mxu0 }
 0x4b6   :  { %v4035_v43 = vadd.f32 %v2701_v42, %v1161_v37  ;;  %v2783_v44 = vpop.f32.mrb[12].mxu1  ;;  %v2703_v47 = vpop.f32.mrb[13].mxu0 }
 0x4b7   :  { %v4037_v9 = vadd.f32 %v2783_v44, %v1169_v38  ;;  %v4036_v49 = vadd.f32 %v2703_v47, %v1165_v39  ;;  %v2785_v50 = vpop.f32.mrb[13].mxu1  ;;  %v2705_v52 = vpop.f32.mrb[14].mxu0 }
 0x4b8   :  { %v2794_v53 = vmax.f32 %v4035_v43, 0.0  ;;  %v4038_v54 = vadd.f32 %v2785_v50, %v1173_v40  ;;  %v2787_v55 = vpop.f32.mrb[14].mxu1  ;;  %v2706_v45 = vpop.f32.mrb[15].mxu0 }
 0x4b9   :  { %v2796_v56 = vmax.f32 %v4037_v9, 0.0  ;;  %v2795_v46 = vmax.f32 %v4036_v49, 0.0  ;;  %v2788_v57 = vpop.f32.mrb[15].mxu1 }
 0x4ba   :  { %v2797_v58 = vmax.f32 %v4038_v54, 0.0  ;;  %v2802_v12 = vpack.c.bf16 %v2794_v53, %v2794_v53 }
 0x4bb   :  { %v2803_v59 = vpack.c.bf16 %v2795_v46, %v2795_v46  ;;  %v2804_v41 = vpack.c.bf16 %v2796_v56, %v2796_v56 }
 0x4bc   :  { %v2805_v60 = vpack.c.bf16 %v2797_v58, %v2797_v58 }
 0x4bd   :  { %3437 = vmatprep.mubr.bf16.mxu0 %v2803_v59 }
 0x4be   :  { %3477 = vmatprep.mubr.bf16.mxu1 %v2805_v60  ;;  %3438 = vmatmul.mubr.bf16.vlgmr.msra.gmra.mrb[20].mxu0 %v2802_v12 }
 0x4bf   :  { %3478 = vmatmul.mubr.bf16.vlgmr.msra.gmra.mrb[20].mxu1 %v2804_v41 }
 0x511   :  { %v3939_v61 = vpop.f32.mrb[16].mxu0  ;;  %v3961_v48 = vpop.f32.mrb[16].mxu1 }
 0x512   :  { %v3940_v63 = vpop.f32.mrb[17].mxu0  ;;  %v3962_v0 = vpop.f32.mrb[17].mxu1 }
 0x513   :  { %v3941_v4 = vadd.f32 %v3940_v63, %v3939_v61  ;;  %v3963_v1 = vadd.f32 %v3962_v0, %v3961_v48  ;;  %v3942_v2 = vpop.f32.mrb[18].mxu0  ;;  %v3964_v5 = vpop.f32.mrb[18].mxu1 }
 0x514   :  { %v3943_v6 = vpop.f32.mrb[19].mxu0  ;;  %v3965_v7 = vpop.f32.mrb[19].mxu1 }
 0x515   :  { %v3360_v8 = vadd.f32 %v3941_v4, %v3849_v62 }
 0x517   :  { %v3400_v10 = vadd.f32 %v3963_v1, %v3360_v8 }
 0x591   :  { %v3983_v11 = vpop.f32.mrb[20].mxu0 }
 0x592   :  { %v4005_v26 = vpop.f32.mrb[20].mxu1  ;;  %v3984_v13 = vpop.f32.mrb[21].mxu0 }
 0x593   :  { %v3985_v14 = vadd.f32 %v3984_v13, %v3983_v11  ;;  %v4006_v15 = vpop.f32.mrb[21].mxu1  ;;  %v3986_v16 = vpop.f32.mrb[22].mxu0 }
 0x594   :  { %v4007_v17 = vadd.f32 %v4006_v15, %v4005_v26  ;;  %v4008_v18 = vpop.f32.mrb[22].mxu1  ;;  %v3987_v19 = vpop.f32.mrb[23].mxu0 }
 0x595   :  { %v3440_v20 = vadd.f32 %v3985_v14, %v3400_v10  ;;  %v4009_v21 = vpop.f32.mrb[23].mxu1 }
 0x597   :  { %v3480_v22 = vadd.f32 %v4007_v17, %v3440_v20 }
 0x599   :  { %3485 = vst [vmem:[#allocation13] sm:$0xff] %v3480_v22 }
 0x59a   :  { %4408 = shalt.err (!%p4405_p10)
}
 0x59b   :  { %s4409_s30 = scalar_lea.hbm %s4701_s11, 128 }
 0x59c   :  { %p4410_p11 = scmp.ne.s32.totalorder %s4701_s11, %s4409_s30  ;;  %p4413_p12 = scmp.lt.u32.totalorder %s4409_s30, %s4701_s11 }
 0x59e   :  { %p4415_p13 = pnand %p4413_p12, %p4410_p11 }
 0x5a0   :  { %4418 = shalt.err (!%p4415_p13)
}
 0x5a1   :  { %3495 = dma.vmem_to_hbm [thread:$0]  %s3493_s22, 128, %s4701_s11, [#allocation4]  }
 0x5a2   :  { %4427 = dma.done.wait [#allocation4], 128  }
 0x5a3   :  { %4428 = vsyncadd [#allocation4], 4294967168 }
 0x5a4   :  { %3499 = vsyncpa [#allocation3], 1 }
 0x5a5   :  { %3500 = vsyncpa [#allocation6], 1 }
 0x5a6   :  { %3501 = vsyncpa [#allocation9], 1 }
 0x5a7   :  { %3502 = vsyncpa [#allocation12], 1 }
 0x5a8   :  { %3503 = vsyncpa [#allocation4], 1 }

</bundles_post_ra>
